<compile_context>
chip_gen: v6e
topology: v6e:2x2x1
jax: 0.10.0
libtpu: 0.0.40
codegen_flags: <defaults>
</compile_context>

<pallas_src>
import functools

import jax
import jax.numpy as jnp
import numpy as np
from jax import lax
from jax.experimental import pallas as pl
from jax.experimental.pallas import tpu as pltpu


def rnn_decoder_kernel(emb_ref, enc_ref, h0_ref, c0_ref,
                       w_ih_ref, w_hh_ref, b_lstm_ref,
                       w_attn_h_ref, w_attn_c_ref, b_attn_ref,
                       w_fc_ref, b_fc_ref,
                       logits_ref, h_out_ref, c_out_ref,
                       out_buf, *, hidden2, t_block):
    tb = pl.program_id(1)          # time-block index
    vb = pl.program_id(2)          # vocab-tile index
    H2 = hidden2
    TB = h0_ref.shape[0]           # batch tile size

    # ---------- recurrent part: run once per time block (only on vocab tile 0) ----------
    @pl.when(vb == 0)
    def _recurrence():
        @pl.when(tb == 0)
        def _():
            # The resident h/c output blocks double as the carried recurrent state.
            h_out_ref[...] = h0_ref[...]
            c_out_ref[...] = c0_ref[...]

        enc = enc_ref[...]                     # (TB, S, H2)  bf16
        w_ih = w_ih_ref[...]                   # (E, 4*H2)    bf16
        w_hh = w_hh_ref[...]                   # (H2, 4*H2)   bf16
        w_ah = w_attn_h_ref[...]               # (H2, H2)     bf16
        w_ac = w_attn_c_ref[...]               # (H2, H2)     bf16
        # Hoist bias broadcasts out of the unrolled loop (broadcast_in_dim is not CSE'd).
        b_lstm = jnp.broadcast_to(b_lstm_ref[...], (TB, 4 * H2))
        b_attn = jnp.broadcast_to(b_attn_ref[...], (TB, H2))

        def step(i, carry):
            h, c = carry                       # f32 (TB, H2)
            x = emb_ref[i]                     # (TB, E)  bf16
            # ---- LSTM cell (PyTorch gate order i, f, g, o); bf16 MXU, f32 accumulate ----
            gates = (jnp.dot(x, w_ih, preferred_element_type=jnp.float32)
                     + jnp.dot(h.astype(jnp.bfloat16), w_hh,
                               preferred_element_type=jnp.float32)
                     + b_lstm)                 # (TB, 4*H2) f32
            i_g = jax.nn.sigmoid(gates[:, 0 * H2:1 * H2])
            f_g = jax.nn.sigmoid(gates[:, 1 * H2:2 * H2])
            g_g = jnp.tanh(gates[:, 2 * H2:3 * H2])
            o_g = jax.nn.sigmoid(gates[:, 3 * H2:4 * H2])
            c_new = f_g * c + i_g * g_g
            c_new = c_new.astype(jnp.float32)
            h_new = o_g * jnp.tanh(c_new)      # (TB, H2) f32 == dec_rnn_out

            # ---- attention: scores/softmax/context as MXU batched matmuls ----
            h_q = h_new.astype(jnp.bfloat16)[:, None, :]             # (TB, 1, H2)
            scores = jnp.einsum('bqh,bsh->bqs', h_q, enc,
                                preferred_element_type=jnp.float32)  # (TB, 1, S)
            m = jnp.max(scores, axis=-1, keepdims=True)
            e = jnp.exp(scores - m)
            denom = jnp.sum(e, axis=-1, keepdims=True)
            attn = e * pl.reciprocal(denom, approx=True)             # softmax over S
            c_t = jnp.einsum('bqs,bsh->bqh', attn.astype(jnp.bfloat16), enc,
                             preferred_element_type=jnp.float32)[:, 0, :]   # (TB, H2)

            # ---- out = tanh(attn_fc([h_new, c_t])) ----
            out = jnp.tanh(
                jnp.dot(h_new.astype(jnp.bfloat16), w_ah,
                        preferred_element_type=jnp.float32)
                + jnp.dot(c_t.astype(jnp.bfloat16), w_ac,
                          preferred_element_type=jnp.float32)
                + b_attn)                      # (TB, H2) f32
            out_buf[i] = out.astype(jnp.bfloat16)
            return h_new, c_new

        h_fin, c_fin = lax.fori_loop(0, t_block, step,
                                     (h_out_ref[...], c_out_ref[...]),
                                     unroll=True)
        h_out_ref[...] = h_fin
        c_out_ref[...] = c_fin

    # ---------- vocab projection for this V tile, all t_block steps ----------
    w_fc = w_fc_ref[...]                                          # (H2, TV) bf16
    b_fc = jnp.broadcast_to(b_fc_ref[...], (TB, w_fc_ref.shape[1]))

    def fc_step(i, carry):
        logits_ref[i] = (jnp.dot(out_buf[i], w_fc,
                                 preferred_element_type=jnp.float32) + b_fc)
        return carry

    lax.fori_loop(0, t_block, fc_step, 0, unroll=True)


def rnn_decoder_forward(dec_X, enc_output, h0, c0, params, *, hidden2,
                        t_block=None, b_block=None, v_block=None):
    """Pallas-backed forward. Returns (logits (B,T,V), (h_n (1,B,H2), c_n (1,B,H2)))."""
    B, T = dec_X.shape
    S = enc_output.shape[1]
    H2 = hidden2
    E = params["w_ih"].shape[0]
    V = params["w_fc"].shape[1]

    if b_block is None:
        b_block = B
    if t_block is None:
        t_block = next(tt for tt in (4, 2, 1) if T % tt == 0)
    if v_block is None:
        if V % 128 == 0:
            v_block = min(V, 2048)
            while V % v_block:
                v_block //= 2
        else:
            v_block = V                         # tiny / unaligned vocab: single tile
    assert B % b_block == 0 and T % t_block == 0 and V % v_block == 0

    bf16 = jnp.bfloat16
    # Embedding lookup (gather) = glue, done in plain JAX; padding_idx=0 row is zero.
    emb_seq = jnp.transpose(params["emb"].astype(bf16)[dec_X], (1, 0, 2))   # (T, B, E) bf16
    enc_bf16 = enc_output.astype(bf16)

    grid = (B // b_block, T // t_block, V // v_block)

    def resident(shape):
        n = len(shape)
        return pl.BlockSpec(shape, lambda bb, tb, vb, _n=n: (0,) * _n)

    kernel = functools.partial(rnn_decoder_kernel, hidden2=H2, t_block=t_block)

    logits_tbv, h_n, c_n = pl.pallas_call(
        kernel,
        out_shape=(
            jax.ShapeDtypeStruct((T, B, V), jnp.float32),
            jax.ShapeDtypeStruct((B, H2), jnp.float32),
            jax.ShapeDtypeStruct((B, H2), jnp.float32),
        ),
        grid_spec=pltpu.PrefetchScalarGridSpec(
            num_scalar_prefetch=0,
            grid=grid,
            in_specs=[
                pl.BlockSpec((t_block, b_block, E), lambda bb, tb, vb: (tb, bb, 0)),  # embeddings
                pl.BlockSpec((b_block, S, H2), lambda bb, tb, vb: (bb, 0, 0)),        # enc_output
                pl.BlockSpec((b_block, H2), lambda bb, tb, vb: (bb, 0)),              # h0
                pl.BlockSpec((b_block, H2), lambda bb, tb, vb: (bb, 0)),              # c0
                resident((E, 4 * H2)),                                                # W_ih^T
                resident((H2, 4 * H2)),                                               # W_hh^T
                resident((1, 4 * H2)),                                                # b_ih + b_hh
                resident((H2, H2)),                                                   # attn_fc W[:, :H2]^T
                resident((H2, H2)),                                                   # attn_fc W[:, H2:]^T
                resident((1, H2)),                                                    # attn_fc bias
                pl.BlockSpec((H2, v_block), lambda bb, tb, vb: (0, vb)),              # dec_fc W^T (streamed)
                pl.BlockSpec((1, v_block), lambda bb, tb, vb: (0, vb)),               # dec_fc bias (streamed)
            ],
            out_specs=[
                pl.BlockSpec((t_block, b_block, v_block), lambda bb, tb, vb: (tb, bb, vb)),
                pl.BlockSpec((b_block, H2), lambda bb, tb, vb: (bb, 0)),              # h_n (carried)
                pl.BlockSpec((b_block, H2), lambda bb, tb, vb: (bb, 0)),              # c_n (carried)
            ],
            scratch_shapes=[
                pltpu.VMEM((t_block, b_block, H2), jnp.bfloat16),   # per-step attn_fc outputs
            ],
        ),
        compiler_params=pltpu.CompilerParams(
            dimension_semantics=("parallel", "arbitrary", "arbitrary")),
    )(emb_seq, enc_bf16, h0, c0,
      params["w_ih"].astype(bf16), params["w_hh"].astype(bf16), params["b_lstm"],
      params["w_attn_h"].astype(bf16), params["w_attn_c"].astype(bf16), params["b_attn"],
      params["w_fc"].astype(bf16), params["b_fc"])

    logits = jnp.transpose(logits_tbv, (1, 0, 2))    # (B, T, V), matches torch cat over dim=1
    return logits, (h_n[None], c_n[None])


def reference_forward(dec_X, enc_output, h0, c0, params, *, hidden2):
    """Pure-JAX (f32) reference replicating the PyTorch forward semantics."""
    B, T = dec_X.shape
    H2 = hidden2
    emb_all = params["emb"][dec_X]
    h, c = h0, c0
    outs = []
    for t in range(T):
        x = emb_all[:, t, :]
        gates = x @ params["w_ih"] + h @ params["w_hh"] + params["b_lstm"][0]
        i_g = jax.nn.sigmoid(gates[:, :H2])
        f_g = jax.nn.sigmoid(gates[:, H2:2 * H2])
        g_g = jnp.tanh(gates[:, 2 * H2:3 * H2])
        o_g = jax.nn.sigmoid(gates[:, 3 * H2:])
        c = f_g * c + i_g * g_g
        h = o_g * jnp.tanh(c)
        scores = jnp.einsum("bsh,bh->bs", enc_output, h)
        a = jax.nn.softmax(scores, axis=1)
        c_t = jnp.einsum("bs,bsh->bh", a, enc_output)
        out = jnp.tanh(h @ params["w_attn_h"] + c_t @ params["w_attn_c"]
                       + params["b_attn"][0])
        outs.append(out @ params["w_fc"] + params["b_fc"][0])
    return jnp.stack(outs, axis=1), h, c


def init_params(key, vocab, emb_dim, hidden2):
    ks = jax.random.split(key, 8)
    scale = 1.0 / np.sqrt(hidden2)
    emb = jax.random.normal(ks[0], (vocab, emb_dim), jnp.float32) * 0.1
    emb = emb.at[0].set(0.0)                                    # padding_idx=0
    w_ih = jax.random.uniform(ks[1], (emb_dim, 4 * hidden2), jnp.float32, -scale, scale)
    w_hh = jax.random.uniform(ks[2], (hidden2, 4 * hidden2), jnp.float32, -scale, scale)
    b_lstm = jax.random.uniform(ks[3], (1, 4 * hidden2), jnp.float32, -scale, scale)
    w_attn_h = jax.random.uniform(ks[4], (hidden2, hidden2), jnp.float32, -scale, scale)
    w_attn_c = jax.random.uniform(ks[5], (hidden2, hidden2), jnp.float32, -scale, scale)
    b_attn = jnp.zeros((1, hidden2), jnp.float32)
    w_fc = jax.random.uniform(ks[6], (hidden2, vocab), jnp.float32, -scale, scale)
    b_fc = jax.random.uniform(ks[7], (1, vocab), jnp.float32, -scale, scale)
    return dict(emb=emb, w_ih=w_ih, w_hh=w_hh, b_lstm=b_lstm,
                w_attn_h=w_attn_h, w_attn_c=w_attn_c, b_attn=b_attn,
                w_fc=w_fc, b_fc=b_fc)


if __name__ == "__main__":
    B, T, S = 2, 8, 16
    rnn_hidden_size = 16
    H2 = 2 * rnn_hidden_size           # LSTM hidden size = rnn_hidden_size * 2
    emb_dim = 32
    vocab = 64

    key = jax.random.PRNGKey(0)
    k_par, k_tok, k_enc, k_h, k_c = jax.random.split(key, 5)

    params = init_params(k_par, vocab, emb_dim, H2)
    dec_X = jax.random.randint(k_tok, (B, T), 0, vocab, dtype=jnp.int32)
    enc_output = jax.random.normal(k_enc, (B, S, H2), jnp.float32)
    h0 = jax.random.normal(k_h, (B, H2), jnp.float32) * 0.1
    c0 = jax.random.normal(k_c, (B, H2), jnp.float32) * 0.1

    logits, (h_n, c_n) = rnn_decoder_forward(dec_X, enc_output, h0, c0, params,
                                             hidden2=H2)
    jax.block_until_ready((logits, h_n, c_n))

    # Compare against an f32 reference evaluated on bf16-rounded weights/encoder
    # states, since the kernel feeds bf16 operands to the MXU (f32 accumulation).
    def bf16_round(x):
        return x.astype(jnp.bfloat16).astype(jnp.float32)

    params_ref = dict(params)
    for name in ("emb", "w_ih", "w_hh", "w_attn_h", "w_attn_c", "w_fc"):
        params_ref[name] = bf16_round(params[name])
    enc_ref = bf16_round(enc_output)

    ref_logits, ref_h, ref_c = reference_forward(dec_X, enc_ref, h0, c0, params_ref,
                                                 hidden2=H2)
    np.testing.assert_allclose(np.asarray(logits), np.asarray(ref_logits),
                               rtol=2e-2, atol=2e-2)
    np.testing.assert_allclose(np.asarray(h_n[0]), np.asarray(ref_h),
                               rtol=2e-2, atol=2e-2)
    np.testing.assert_allclose(np.asarray(c_n[0]), np.asarray(ref_c),
                               rtol=2e-2, atol=2e-2)

    assert logits.shape == (B, T, vocab)
    assert h_n.shape == (1, B, H2) and c_n.shape == (1, B, H2)
    print("KERNEL_OK")
</pallas_src>

<mosaic_0001>
module attributes {stable_mosaic.version = 11 : i64} {
  func.func @rnn_decoder_kernel(%arg0: i32, %arg1: i32, %arg2: i32, %arg3: memref<4x2x32xbf16, #tpu.memory_space<vmem>>, %arg4: memref<2x16x32xbf16, #tpu.memory_space<vmem>>, %arg5: memref<2x32xf32, #tpu.memory_space<vmem>>, %arg6: memref<2x32xf32, #tpu.memory_space<vmem>>, %arg7: memref<32x128xbf16, #tpu.memory_space<vmem>>, %arg8: memref<32x128xbf16, #tpu.memory_space<vmem>>, %arg9: memref<1x128xf32, #tpu.memory_space<vmem>>, %arg10: memref<32x32xbf16, #tpu.memory_space<vmem>>, %arg11: memref<32x32xbf16, #tpu.memory_space<vmem>>, %arg12: memref<1x32xf32, #tpu.memory_space<vmem>>, %arg13: memref<32x64xbf16, #tpu.memory_space<vmem>>, %arg14: memref<1x64xf32, #tpu.memory_space<vmem>>, %arg15: memref<4x2x64xf32, #tpu.memory_space<vmem>>, %arg16: memref<2x32xf32, #tpu.memory_space<vmem>>, %arg17: memref<2x32xf32, #tpu.memory_space<vmem>>, %arg18: memref<4x2x32xbf16, #tpu.memory_space<vmem>>) attributes {dimension_semantics = [#tpu.dimension_semantics<parallel>, #tpu.dimension_semantics<arbitrary>, #tpu.dimension_semantics<arbitrary>], iteration_bounds = array<i64: 1, 2, 1>, scalar_prefetch = 0 : i64, scratch_operands = 1 : i64, tpu.core_type = #tpu.core_type<tc>, window_params = [{transform_indices = @transform_0, window_bounds = array<i64: 4, 2, 32>}, {transform_indices = @transform_1, window_bounds = array<i64: 2, 16, 32>}, {transform_indices = @transform_2, window_bounds = array<i64: 2, 32>}, {transform_indices = @transform_3, window_bounds = array<i64: 2, 32>}, {pipeline_mode = #tpu.pipeline_mode<synchronous>, transform_indices = @transform_4, window_bounds = array<i64: 32, 128>}, {pipeline_mode = #tpu.pipeline_mode<synchronous>, transform_indices = @transform_5, window_bounds = array<i64: 32, 128>}, {pipeline_mode = #tpu.pipeline_mode<synchronous>, transform_indices = @transform_6, window_bounds = array<i64: 1, 128>}, {pipeline_mode = #tpu.pipeline_mode<synchronous>, transform_indices = @transform_7, window_bounds = array<i64: 32, 32>}, {pipeline_mode = #tpu.pipeline_mode<synchronous>, transform_indices = @transform_8, window_bounds = array<i64: 32, 32>}, {pipeline_mode = #tpu.pipeline_mode<synchronous>, transform_indices = @transform_9, window_bounds = array<i64: 1, 32>}, {transform_indices = @transform_10, window_bounds = array<i64: 32, 64>}, {transform_indices = @transform_11, window_bounds = array<i64: 1, 64>}, {transform_indices = @transform_12, window_bounds = array<i64: 4, 2, 64>}, {transform_indices = @transform_13, window_bounds = array<i64: 2, 32>}, {transform_indices = @transform_14, window_bounds = array<i64: 2, 32>}]} {
    %c0_i32 = arith.constant 0 : i32
    %0 = arith.cmpi eq, %arg2, %c0_i32 : i32
    %1 = arith.extui %0 : i1 to i32
    %c0_i32_0 = arith.constant 0 : i32
    %2 = arith.cmpi ne, %1, %c0_i32_0 : i32
    scf.if %2 {
      %c0_i32_24 = arith.constant 0 : i32
      %43 = arith.cmpi eq, %arg1, %c0_i32_24 : i32
      %44 = arith.extui %43 : i1 to i32
      %c0_i32_25 = arith.constant 0 : i32
      %45 = arith.cmpi ne, %44, %c0_i32_25 : i32
      scf.if %45 {
        %c0_114 = arith.constant 0 : index
        %c0_115 = arith.constant 0 : index
        %305 = vector.load %arg5[%c0_114, %c0_115] : memref<2x32xf32, #tpu.memory_space<vmem>>, vector<2x32xf32>
        %c0_116 = arith.constant 0 : index
        %c0_117 = arith.constant 0 : index
        %306 = vector.load %arg16[%c0_116, %c0_117] : memref<2x32xf32, #tpu.memory_space<vmem>>, vector<2x32xf32>
        tpu.vector_store %arg16[%c0_116, %c0_117], %305 {strides = array<i32>} : memref<2x32xf32, #tpu.memory_space<vmem>>, vector<2x32xf32>,
        %c0_118 = arith.constant 0 : index
        %c0_119 = arith.constant 0 : index
        %307 = vector.load %arg6[%c0_118, %c0_119] : memref<2x32xf32, #tpu.memory_space<vmem>>, vector<2x32xf32>
        %c0_120 = arith.constant 0 : index
        %c0_121 = arith.constant 0 : index
        %308 = vector.load %arg17[%c0_120, %c0_121] : memref<2x32xf32, #tpu.memory_space<vmem>>, vector<2x32xf32>
        tpu.vector_store %arg17[%c0_120, %c0_121], %307 {strides = array<i32>} : memref<2x32xf32, #tpu.memory_space<vmem>>, vector<2x32xf32>,
      } else {
      }
      %c0_26 = arith.constant 0 : index
      %c0_27 = arith.constant 0 : index
      %c0_28 = arith.constant 0 : index
      %46 = vector.load %arg4[%c0_26, %c0_27, %c0_28] : memref<2x16x32xbf16, #tpu.memory_space<vmem>>, vector<2x16x32xbf16>
      %c0_29 = arith.constant 0 : index
      %c0_30 = arith.constant 0 : index
      %47 = vector.load %arg7[%c0_29, %c0_30] : memref<32x128xbf16, #tpu.memory_space<vmem>>, vector<32x128xbf16>
      %c0_31 = arith.constant 0 : index
      %c0_32 = arith.constant 0 : index
      %48 = vector.load %arg8[%c0_31, %c0_32] : memref<32x128xbf16, #tpu.memory_space<vmem>>, vector<32x128xbf16>
      %c0_33 = arith.constant 0 : index
      %c0_34 = arith.constant 0 : index
      %49 = vector.load %arg10[%c0_33, %c0_34] : memref<32x32xbf16, #tpu.memory_space<vmem>>, vector<32x32xbf16>
      %c0_35 = arith.constant 0 : index
      %c0_36 = arith.constant 0 : index
      %50 = vector.load %arg11[%c0_35, %c0_36] : memref<32x32xbf16, #tpu.memory_space<vmem>>, vector<32x32xbf16>
      %c0_37 = arith.constant 0 : index
      %c0_38 = arith.constant 0 : index
      %51 = vector.load %arg9[%c0_37, %c0_38] : memref<1x128xf32, #tpu.memory_space<vmem>>, vector<1x128xf32>
      %52 = vector.shape_cast %51 : vector<1x128xf32> to vector<1x128xf32>
      %53 = vector.broadcast %52 : vector<1x128xf32> to vector<2x128xf32>
      %c0_39 = arith.constant 0 : index
      %c0_40 = arith.constant 0 : index
      %54 = vector.load %arg12[%c0_39, %c0_40] : memref<1x32xf32, #tpu.memory_space<vmem>>, vector<1x32xf32>
      %55 = vector.shape_cast %54 : vector<1x32xf32> to vector<1x32xf32>
      %56 = vector.broadcast %55 : vector<1x32xf32> to vector<2x32xf32>
      %c0_41 = arith.constant 0 : index
      %c0_42 = arith.constant 0 : index
      %57 = vector.load %arg16[%c0_41, %c0_42] : memref<2x32xf32, #tpu.memory_space<vmem>>, vector<2x32xf32>
      %c0_43 = arith.constant 0 : index
      %c0_44 = arith.constant 0 : index
      %58 = vector.load %arg17[%c0_43, %c0_44] : memref<2x32xf32, #tpu.memory_space<vmem>>, vector<2x32xf32>
      %c0_i32_45 = arith.constant 0 : i32
      %59 = arith.index_cast %c0_i32_45 : i32 to index
      %c0_46 = arith.constant 0 : index
      %c0_47 = arith.constant 0 : index
      %60 = vector.load %arg3[%59, %c0_46, %c0_47] : memref<4x2x32xbf16, #tpu.memory_space<vmem>>, vector<1x2x32xbf16>
      %61 = vector.shape_cast %60 : vector<1x2x32xbf16> to vector<2x32xbf16>
      %cst_48 = arith.constant dense<0.000000e+00> : vector<2x128xf32>
      %62 = tpu.matmul %61, %47, %cst_48 {dimension_numbers = #tpu.dot_dimension_numbers<[1], [0], [0], [1], [0, 0, 1, 1], [], []>} : vector<2x32xbf16>, vector<32x128xbf16>, vector<2x128xf32> -> vector<2x128xf32>
      %63 = arith.truncf %57 : vector<2x32xf32> to vector<2x32xbf16>
      %cst_49 = arith.constant dense<0.000000e+00> : vector<2x128xf32>
      %64 = tpu.matmul %63, %48, %cst_49 {dimension_numbers = #tpu.dot_dimension_numbers<[1], [0], [0], [1], [0, 0, 1, 1], [], []>} : vector<2x32xbf16>, vector<32x128xbf16>, vector<2x128xf32> -> vector<2x128xf32>
      %65 = arith.addf %62, %64 : vector<2x128xf32>
      %66 = arith.addf %65, %53 : vector<2x128xf32>
      %67 = vector.extract_strided_slice %66 {offsets = [0, 0], sizes = [2, 32], strides = [1, 1]} : vector<2x128xf32> to vector<2x32xf32>
      %68 = arith.negf %67 : vector<2x32xf32>
      %69 = math.exp %68 : vector<2x32xf32>
      %cst_50 = arith.constant 1.000000e+00 : f32
      %70 = vector.broadcast %cst_50 : f32 to vector<2x32xf32>
      %71 = arith.addf %70, %69 : vector<2x32xf32>
      %72 = arith.divf %70, %71 : vector<2x32xf32>
      %73 = vector.extract_strided_slice %66 {offsets = [0, 32], sizes = [2, 32], strides = [1, 1]} : vector<2x128xf32> to vector<2x32xf32>
      %74 = arith.negf %73 : vector<2x32xf32>
      %75 = math.exp %74 : vector<2x32xf32>
      %cst_51 = arith.constant 1.000000e+00 : f32
      %76 = vector.broadcast %cst_51 : f32 to vector<2x32xf32>
      %77 = arith.addf %76, %75 : vector<2x32xf32>
      %78 = arith.divf %76, %77 : vector<2x32xf32>
      %79 = vector.extract_strided_slice %66 {offsets = [0, 64], sizes = [2, 32], strides = [1, 1]} : vector<2x128xf32> to vector<2x32xf32>
      %80 = math.tanh %79 : vector<2x32xf32>
      %81 = vector.extract_strided_slice %66 {offsets = [0, 96], sizes = [2, 32], strides = [1, 1]} : vector<2x128xf32> to vector<2x32xf32>
      %82 = arith.negf %81 : vector<2x32xf32>
      %83 = math.exp %82 : vector<2x32xf32>
      %cst_52 = arith.constant 1.000000e+00 : f32
      %84 = vector.broadcast %cst_52 : f32 to vector<2x32xf32>
      %85 = arith.addf %84, %83 : vector<2x32xf32>
      %86 = arith.divf %84, %85 : vector<2x32xf32>
      %87 = arith.mulf %78, %58 : vector<2x32xf32>
      %88 = arith.mulf %72, %80 : vector<2x32xf32>
      %89 = arith.addf %87, %88 : vector<2x32xf32>
      %90 = math.tanh %89 : vector<2x32xf32>
      %91 = arith.mulf %86, %90 : vector<2x32xf32>
      %92 = arith.truncf %91 : vector<2x32xf32> to vector<2x32xbf16>
      %93 = vector.shape_cast %92 : vector<2x32xbf16> to vector<2x1x32xbf16>
      "tpu.trace_start"() <{level = 10 : i32, message = "bqh,bsh->bqs"}> : () -> ()
      %cst_53 = arith.constant dense<0.000000e+00> : vector<2x1x16xf32>
      %94 = tpu.matmul %93, %46, %cst_53 {dimension_numbers = #tpu.dot_dimension_numbers<[2], [2], [1], [1], [0, 0, 0, 1, 1, 1], [0], [0]>} : vector<2x1x32xbf16>, vector<2x16x32xbf16>, vector<2x1x16xf32> -> vector<2x1x16xf32>
      "tpu.trace_stop"() : () -> ()
      %cst_54 = arith.constant dense<0xFF800000> : vector<2x1xf32>
      %95 = vector.multi_reduction <maximumf>, %94, %cst_54 [2] : vector<2x1x16xf32> to vector<2x1xf32>
      %96 = vector.shape_cast %95 : vector<2x1xf32> to vector<2x1x1xf32>
      %97 = vector.broadcast %96 : vector<2x1x1xf32> to vector<2x1x16xf32>
      %98 = arith.subf %94, %97 : vector<2x1x16xf32>
      %99 = math.exp %98 : vector<2x1x16xf32>
      %cst_55 = arith.constant dense<0.000000e+00> : vector<2x1xf32>
      %100 = vector.multi_reduction <add>, %99, %cst_55 [2] : vector<2x1x16xf32> to vector<2x1xf32>
      %101 = vector.shape_cast %100 : vector<2x1xf32> to vector<2x1x1xf32>
      %102 = tpu.reciprocal %101 {approx = true} : vector<2x1x1xf32> -> vector<2x1x1xf32>
      %103 = vector.broadcast %102 : vector<2x1x1xf32> to vector<2x1x16xf32>
      %104 = arith.mulf %99, %103 : vector<2x1x16xf32>
      %105 = arith.truncf %104 : vector<2x1x16xf32> to vector<2x1x16xbf16>
      "tpu.trace_start"() <{level = 10 : i32, message = "bqs,bsh->bqh"}> : () -> ()
      %cst_56 = arith.constant dense<0.000000e+00> : vector<2x1x32xf32>
      %106 = tpu.matmul %105, %46, %cst_56 {dimension_numbers = #tpu.dot_dimension_numbers<[2], [1], [1], [2], [0, 0, 0, 1, 1, 2], [0], [0]>} : vector<2x1x16xbf16>, vector<2x16x32xbf16>, vector<2x1x32xf32> -> vector<2x1x32xf32>
      "tpu.trace_stop"() : () -> ()
      %107 = vector.shape_cast %106 : vector<2x1x32xf32> to vector<2x32xf32>
      %108 = arith.truncf %91 : vector<2x32xf32> to vector<2x32xbf16>
      %cst_57 = arith.constant dense<0.000000e+00> : vector<2x32xf32>
      %109 = tpu.matmul %108, %49, %cst_57 {dimension_numbers = #tpu.dot_dimension_numbers<[1], [0], [0], [1], [0, 0, 1, 1], [], []>} : vector<2x32xbf16>, vector<32x32xbf16>, vector<2x32xf32> -> vector<2x32xf32>
      %110 = arith.truncf %107 : vector<2x32xf32> to vector<2x32xbf16>
      %cst_58 = arith.constant dense<0.000000e+00> : vector<2x32xf32>
      %111 = tpu.matmul %110, %50, %cst_58 {dimension_numbers = #tpu.dot_dimension_numbers<[1], [0], [0], [1], [0, 0, 1, 1], [], []>} : vector<2x32xbf16>, vector<32x32xbf16>, vector<2x32xf32> -> vector<2x32xf32>
      %112 = arith.addf %109, %111 : vector<2x32xf32>
      %113 = arith.addf %112, %56 : vector<2x32xf32>
      %114 = math.tanh %113 : vector<2x32xf32>
      %115 = arith.truncf %114 : vector<2x32xf32> to vector<2x32xbf16>
      %116 = arith.index_cast %c0_i32_45 : i32 to index
      %c0_59 = arith.constant 0 : index
      %c0_60 = arith.constant 0 : index
      %117 = vector.load %arg18[%116, %c0_59, %c0_60] : memref<4x2x32xbf16, #tpu.memory_space<vmem>>, vector<1x2x32xbf16>
      %118 = vector.shape_cast %117 : vector<1x2x32xbf16> to vector<2x32xbf16>
      %119 = vector.shape_cast %115 : vector<2x32xbf16> to vector<1x2x32xbf16>
      tpu.vector_store %arg18[%116, %c0_59, %c0_60], %119 {strides = array<i32>} : memref<4x2x32xbf16, #tpu.memory_space<vmem>>, vector<1x2x32xbf16>,
      %c1_i32_61 = arith.constant 1 : i32
      %120 = arith.index_cast %c1_i32_61 : i32 to index
      %c0_62 = arith.constant 0 : index
      %c0_63 = arith.constant 0 : index
      %121 = vector.load %arg3[%120, %c0_62, %c0_63] : memref<4x2x32xbf16, #tpu.memory_space<vmem>>, vector<1x2x32xbf16>
      %122 = vector.shape_cast %121 : vector<1x2x32xbf16> to vector<2x32xbf16>
      %cst_64 = arith.constant dense<0.000000e+00> : vector<2x128xf32>
      %123 = tpu.matmul %122, %47, %cst_64 {dimension_numbers = #tpu.dot_dimension_numbers<[1], [0], [0], [1], [0, 0, 1, 1], [], []>} : vector<2x32xbf16>, vector<32x128xbf16>, vector<2x128xf32> -> vector<2x128xf32>
      %124 = arith.truncf %91 : vector<2x32xf32> to vector<2x32xbf16>
      %cst_65 = arith.constant dense<0.000000e+00> : vector<2x128xf32>
      %125 = tpu.matmul %124, %48, %cst_65 {dimension_numbers = #tpu.dot_dimension_numbers<[1], [0], [0], [1], [0, 0, 1, 1], [], []>} : vector<2x32xbf16>, vector<32x128xbf16>, vector<2x128xf32> -> vector<2x128xf32>
      %126 = arith.addf %123, %125 : vector<2x128xf32>
      %127 = arith.addf %126, %53 : vector<2x128xf32>
      %128 = vector.extract_strided_slice %127 {offsets = [0, 0], sizes = [2, 32], strides = [1, 1]} : vector<2x128xf32> to vector<2x32xf32>
      %129 = arith.negf %128 : vector<2x32xf32>
      %130 = math.exp %129 : vector<2x32xf32>
      %cst_66 = arith.constant 1.000000e+00 : f32
      %131 = vector.broadcast %cst_66 : f32 to vector<2x32xf32>
      %132 = arith.addf %131, %130 : vector<2x32xf32>
      %133 = arith.divf %131, %132 : vector<2x32xf32>
      %134 = vector.extract_strided_slice %127 {offsets = [0, 32], sizes = [2, 32], strides = [1, 1]} : vector<2x128xf32> to vector<2x32xf32>
      %135 = arith.negf %134 : vector<2x32xf32>
      %136 = math.exp %135 : vector<2x32xf32>
      %cst_67 = arith.constant 1.000000e+00 : f32
      %137 = vector.broadcast %cst_67 : f32 to vector<2x32xf32>
      %138 = arith.addf %137, %136 : vector<2x32xf32>
      %139 = arith.divf %137, %138 : vector<2x32xf32>
      %140 = vector.extract_strided_slice %127 {offsets = [0, 64], sizes = [2, 32], strides = [1, 1]} : vector<2x128xf32> to vector<2x32xf32>
      %141 = math.tanh %140 : vector<2x32xf32>
      %142 = vector.extract_strided_slice %127 {offsets = [0, 96], sizes = [2, 32], strides = [1, 1]} : vector<2x128xf32> to vector<2x32xf32>
      %143 = arith.negf %142 : vector<2x32xf32>
      %144 = math.exp %143 : vector<2x32xf32>
      %cst_68 = arith.constant 1.000000e+00 : f32
      %145 = vector.broadcast %cst_68 : f32 to vector<2x32xf32>
      %146 = arith.addf %145, %144 : vector<2x32xf32>
      %147 = arith.divf %145, %146 : vector<2x32xf32>
      %148 = arith.mulf %139, %89 : vector<2x32xf32>
      %149 = arith.mulf %133, %141 : vector<2x32xf32>
      %150 = arith.addf %148, %149 : vector<2x32xf32>
      %151 = math.tanh %150 : vector<2x32xf32>
      %152 = arith.mulf %147, %151 : vector<2x32xf32>
      %153 = arith.truncf %152 : vector<2x32xf32> to vector<2x32xbf16>
      %154 = vector.shape_cast %153 : vector<2x32xbf16> to vector<2x1x32xbf16>
      "tpu.trace_start"() <{level = 10 : i32, message = "bqh,bsh->bqs"}> : () -> ()
      %cst_69 = arith.constant dense<0.000000e+00> : vector<2x1x16xf32>
      %155 = tpu.matmul %154, %46, %cst_69 {dimension_numbers = #tpu.dot_dimension_numbers<[2], [2], [1], [1], [0, 0, 0, 1, 1, 1], [0], [0]>} : vector<2x1x32xbf16>, vector<2x16x32xbf16>, vector<2x1x16xf32> -> vector<2x1x16xf32>
      "tpu.trace_stop"() : () -> ()
      %cst_70 = arith.constant dense<0xFF800000> : vector<2x1xf32>
      %156 = vector.multi_reduction <maximumf>, %155, %cst_70 [2] : vector<2x1x16xf32> to vector<2x1xf32>
      %157 = vector.shape_cast %156 : vector<2x1xf32> to vector<2x1x1xf32>
      %158 = vector.broadcast %157 : vector<2x1x1xf32> to vector<2x1x16xf32>
      %159 = arith.subf %155, %158 : vector<2x1x16xf32>
      %160 = math.exp %159 : vector<2x1x16xf32>
      %cst_71 = arith.constant dense<0.000000e+00> : vector<2x1xf32>
      %161 = vector.multi_reduction <add>, %160, %cst_71 [2] : vector<2x1x16xf32> to vector<2x1xf32>
      %162 = vector.shape_cast %161 : vector<2x1xf32> to vector<2x1x1xf32>
      %163 = tpu.reciprocal %162 {approx = true} : vector<2x1x1xf32> -> vector<2x1x1xf32>
      %164 = vector.broadcast %163 : vector<2x1x1xf32> to vector<2x1x16xf32>
      %165 = arith.mulf %160, %164 : vector<2x1x16xf32>
      %166 = arith.truncf %165 : vector<2x1x16xf32> to vector<2x1x16xbf16>
      "tpu.trace_start"() <{level = 10 : i32, message = "bqs,bsh->bqh"}> : () -> ()
      %cst_72 = arith.constant dense<0.000000e+00> : vector<2x1x32xf32>
      %167 = tpu.matmul %166, %46, %cst_72 {dimension_numbers = #tpu.dot_dimension_numbers<[2], [1], [1], [2], [0, 0, 0, 1, 1, 2], [0], [0]>} : vector<2x1x16xbf16>, vector<2x16x32xbf16>, vector<2x1x32xf32> -> vector<2x1x32xf32>
      "tpu.trace_stop"() : () -> ()
      %168 = vector.shape_cast %167 : vector<2x1x32xf32> to vector<2x32xf32>
      %169 = arith.truncf %152 : vector<2x32xf32> to vector<2x32xbf16>
      %cst_73 = arith.constant dense<0.000000e+00> : vector<2x32xf32>
      %170 = tpu.matmul %169, %49, %cst_73 {dimension_numbers = #tpu.dot_dimension_numbers<[1], [0], [0], [1], [0, 0, 1, 1], [], []>} : vector<2x32xbf16>, vector<32x32xbf16>, vector<2x32xf32> -> vector<2x32xf32>
      %171 = arith.truncf %168 : vector<2x32xf32> to vector<2x32xbf16>
      %cst_74 = arith.constant dense<0.000000e+00> : vector<2x32xf32>
      %172 = tpu.matmul %171, %50, %cst_74 {dimension_numbers = #tpu.dot_dimension_numbers<[1], [0], [0], [1], [0, 0, 1, 1], [], []>} : vector<2x32xbf16>, vector<32x32xbf16>, vector<2x32xf32> -> vector<2x32xf32>
      %173 = arith.addf %170, %172 : vector<2x32xf32>
      %174 = arith.addf %173, %56 : vector<2x32xf32>
      %175 = math.tanh %174 : vector<2x32xf32>
      %176 = arith.truncf %175 : vector<2x32xf32> to vector<2x32xbf16>
      %177 = arith.index_cast %c1_i32_61 : i32 to index
      %c0_75 = arith.constant 0 : index
      %c0_76 = arith.constant 0 : index
      %178 = vector.load %arg18[%177, %c0_75, %c0_76] : memref<4x2x32xbf16, #tpu.memory_space<vmem>>, vector<1x2x32xbf16>
      %179 = vector.shape_cast %178 : vector<1x2x32xbf16> to vector<2x32xbf16>
      %180 = vector.shape_cast %176 : vector<2x32xbf16> to vector<1x2x32xbf16>
      tpu.vector_store %arg18[%177, %c0_75, %c0_76], %180 {strides = array<i32>} : memref<4x2x32xbf16, #tpu.memory_space<vmem>>, vector<1x2x32xbf16>,
      %c2_i32_77 = arith.constant 2 : i32
      %181 = arith.index_cast %c2_i32_77 : i32 to index
      %c0_78 = arith.constant 0 : index
      %c0_79 = arith.constant 0 : index
      %182 = vector.load %arg3[%181, %c0_78, %c0_79] : memref<4x2x32xbf16, #tpu.memory_space<vmem>>, vector<1x2x32xbf16>
      %183 = vector.shape_cast %182 : vector<1x2x32xbf16> to vector<2x32xbf16>
      %cst_80 = arith.constant dense<0.000000e+00> : vector<2x128xf32>
      %184 = tpu.matmul %183, %47, %cst_80 {dimension_numbers = #tpu.dot_dimension_numbers<[1], [0], [0], [1], [0, 0, 1, 1], [], []>} : vector<2x32xbf16>, vector<32x128xbf16>, vector<2x128xf32> -> vector<2x128xf32>
      %185 = arith.truncf %152 : vector<2x32xf32> to vector<2x32xbf16>
      %cst_81 = arith.constant dense<0.000000e+00> : vector<2x128xf32>
      %186 = tpu.matmul %185, %48, %cst_81 {dimension_numbers = #tpu.dot_dimension_numbers<[1], [0], [0], [1], [0, 0, 1, 1], [], []>} : vector<2x32xbf16>, vector<32x128xbf16>, vector<2x128xf32> -> vector<2x128xf32>
      %187 = arith.addf %184, %186 : vector<2x128xf32>
      %188 = arith.addf %187, %53 : vector<2x128xf32>
      %189 = vector.extract_strided_slice %188 {offsets = [0, 0], sizes = [2, 32], strides = [1, 1]} : vector<2x128xf32> to vector<2x32xf32>
      %190 = arith.negf %189 : vector<2x32xf32>
      %191 = math.exp %190 : vector<2x32xf32>
      %cst_82 = arith.constant 1.000000e+00 : f32
      %192 = vector.broadcast %cst_82 : f32 to vector<2x32xf32>
      %193 = arith.addf %192, %191 : vector<2x32xf32>
      %194 = arith.divf %192, %193 : vector<2x32xf32>
      %195 = vector.extract_strided_slice %188 {offsets = [0, 32], sizes = [2, 32], strides = [1, 1]} : vector<2x128xf32> to vector<2x32xf32>
      %196 = arith.negf %195 : vector<2x32xf32>
      %197 = math.exp %196 : vector<2x32xf32>
      %cst_83 = arith.constant 1.000000e+00 : f32
      %198 = vector.broadcast %cst_83 : f32 to vector<2x32xf32>
      %199 = arith.addf %198, %197 : vector<2x32xf32>
      %200 = arith.divf %198, %199 : vector<2x32xf32>
      %201 = vector.extract_strided_slice %188 {offsets = [0, 64], sizes = [2, 32], strides = [1, 1]} : vector<2x128xf32> to vector<2x32xf32>
      %202 = math.tanh %201 : vector<2x32xf32>
      %203 = vector.extract_strided_slice %188 {offsets = [0, 96], sizes = [2, 32], strides = [1, 1]} : vector<2x128xf32> to vector<2x32xf32>
      %204 = arith.negf %203 : vector<2x32xf32>
      %205 = math.exp %204 : vector<2x32xf32>
      %cst_84 = arith.constant 1.000000e+00 : f32
      %206 = vector.broadcast %cst_84 : f32 to vector<2x32xf32>
      %207 = arith.addf %206, %205 : vector<2x32xf32>
      %208 = arith.divf %206, %207 : vector<2x32xf32>
      %209 = arith.mulf %200, %150 : vector<2x32xf32>
      %210 = arith.mulf %194, %202 : vector<2x32xf32>
      %211 = arith.addf %209, %210 : vector<2x32xf32>
      %212 = math.tanh %211 : vector<2x32xf32>
      %213 = arith.mulf %208, %212 : vector<2x32xf32>
      %214 = arith.truncf %213 : vector<2x32xf32> to vector<2x32xbf16>
      %215 = vector.shape_cast %214 : vector<2x32xbf16> to vector<2x1x32xbf16>
      "tpu.trace_start"() <{level = 10 : i32, message = "bqh,bsh->bqs"}> : () -> ()
      %cst_85 = arith.constant dense<0.000000e+00> : vector<2x1x16xf32>
      %216 = tpu.matmul %215, %46, %cst_85 {dimension_numbers = #tpu.dot_dimension_numbers<[2], [2], [1], [1], [0, 0, 0, 1, 1, 1], [0], [0]>} : vector<2x1x32xbf16>, vector<2x16x32xbf16>, vector<2x1x16xf32> -> vector<2x1x16xf32>
      "tpu.trace_stop"() : () -> ()
      %cst_86 = arith.constant dense<0xFF800000> : vector<2x1xf32>
      %217 = vector.multi_reduction <maximumf>, %216, %cst_86 [2] : vector<2x1x16xf32> to vector<2x1xf32>
      %218 = vector.shape_cast %217 : vector<2x1xf32> to vector<2x1x1xf32>
      %219 = vector.broadcast %218 : vector<2x1x1xf32> to vector<2x1x16xf32>
      %220 = arith.subf %216, %219 : vector<2x1x16xf32>
      %221 = math.exp %220 : vector<2x1x16xf32>
      %cst_87 = arith.constant dense<0.000000e+00> : vector<2x1xf32>
      %222 = vector.multi_reduction <add>, %221, %cst_87 [2] : vector<2x1x16xf32> to vector<2x1xf32>
      %223 = vector.shape_cast %222 : vector<2x1xf32> to vector<2x1x1xf32>
      %224 = tpu.reciprocal %223 {approx = true} : vector<2x1x1xf32> -> vector<2x1x1xf32>
      %225 = vector.broadcast %224 : vector<2x1x1xf32> to vector<2x1x16xf32>
      %226 = arith.mulf %221, %225 : vector<2x1x16xf32>
      %227 = arith.truncf %226 : vector<2x1x16xf32> to vector<2x1x16xbf16>
      "tpu.trace_start"() <{level = 10 : i32, message = "bqs,bsh->bqh"}> : () -> ()
      %cst_88 = arith.constant dense<0.000000e+00> : vector<2x1x32xf32>
      %228 = tpu.matmul %227, %46, %cst_88 {dimension_numbers = #tpu.dot_dimension_numbers<[2], [1], [1], [2], [0, 0, 0, 1, 1, 2], [0], [0]>} : vector<2x1x16xbf16>, vector<2x16x32xbf16>, vector<2x1x32xf32> -> vector<2x1x32xf32>
      "tpu.trace_stop"() : () -> ()
      %229 = vector.shape_cast %228 : vector<2x1x32xf32> to vector<2x32xf32>
      %230 = arith.truncf %213 : vector<2x32xf32> to vector<2x32xbf16>
      %cst_89 = arith.constant dense<0.000000e+00> : vector<2x32xf32>
      %231 = tpu.matmul %230, %49, %cst_89 {dimension_numbers = #tpu.dot_dimension_numbers<[1], [0], [0], [1], [0, 0, 1, 1], [], []>} : vector<2x32xbf16>, vector<32x32xbf16>, vector<2x32xf32> -> vector<2x32xf32>
      %232 = arith.truncf %229 : vector<2x32xf32> to vector<2x32xbf16>
      %cst_90 = arith.constant dense<0.000000e+00> : vector<2x32xf32>
      %233 = tpu.matmul %232, %50, %cst_90 {dimension_numbers = #tpu.dot_dimension_numbers<[1], [0], [0], [1], [0, 0, 1, 1], [], []>} : vector<2x32xbf16>, vector<32x32xbf16>, vector<2x32xf32> -> vector<2x32xf32>
      %234 = arith.addf %231, %233 : vector<2x32xf32>
      %235 = arith.addf %234, %56 : vector<2x32xf32>
      %236 = math.tanh %235 : vector<2x32xf32>
      %237 = arith.truncf %236 : vector<2x32xf32> to vector<2x32xbf16>
      %238 = arith.index_cast %c2_i32_77 : i32 to index
      %c0_91 = arith.constant 0 : index
      %c0_92 = arith.constant 0 : index
      %239 = vector.load %arg18[%238, %c0_91, %c0_92] : memref<4x2x32xbf16, #tpu.memory_space<vmem>>, vector<1x2x32xbf16>
      %240 = vector.shape_cast %239 : vector<1x2x32xbf16> to vector<2x32xbf16>
      %241 = vector.shape_cast %237 : vector<2x32xbf16> to vector<1x2x32xbf16>
      tpu.vector_store %arg18[%238, %c0_91, %c0_92], %241 {strides = array<i32>} : memref<4x2x32xbf16, #tpu.memory_space<vmem>>, vector<1x2x32xbf16>,
      %c3_i32_93 = arith.constant 3 : i32
      %242 = arith.index_cast %c3_i32_93 : i32 to index
      %c0_94 = arith.constant 0 : index
      %c0_95 = arith.constant 0 : index
      %243 = vector.load %arg3[%242, %c0_94, %c0_95] : memref<4x2x32xbf16, #tpu.memory_space<vmem>>, vector<1x2x32xbf16>
      %244 = vector.shape_cast %243 : vector<1x2x32xbf16> to vector<2x32xbf16>
      %cst_96 = arith.constant dense<0.000000e+00> : vector<2x128xf32>
      %245 = tpu.matmul %244, %47, %cst_96 {dimension_numbers = #tpu.dot_dimension_numbers<[1], [0], [0], [1], [0, 0, 1, 1], [], []>} : vector<2x32xbf16>, vector<32x128xbf16>, vector<2x128xf32> -> vector<2x128xf32>
      %246 = arith.truncf %213 : vector<2x32xf32> to vector<2x32xbf16>
      %cst_97 = arith.constant dense<0.000000e+00> : vector<2x128xf32>
      %247 = tpu.matmul %246, %48, %cst_97 {dimension_numbers = #tpu.dot_dimension_numbers<[1], [0], [0], [1], [0, 0, 1, 1], [], []>} : vector<2x32xbf16>, vector<32x128xbf16>, vector<2x128xf32> -> vector<2x128xf32>
      %248 = arith.addf %245, %247 : vector<2x128xf32>
      %249 = arith.addf %248, %53 : vector<2x128xf32>
      %250 = vector.extract_strided_slice %249 {offsets = [0, 0], sizes = [2, 32], strides = [1, 1]} : vector<2x128xf32> to vector<2x32xf32>
      %251 = arith.negf %250 : vector<2x32xf32>
      %252 = math.exp %251 : vector<2x32xf32>
      %cst_98 = arith.constant 1.000000e+00 : f32
      %253 = vector.broadcast %cst_98 : f32 to vector<2x32xf32>
      %254 = arith.addf %253, %252 : vector<2x32xf32>
      %255 = arith.divf %253, %254 : vector<2x32xf32>
      %256 = vector.extract_strided_slice %249 {offsets = [0, 32], sizes = [2, 32], strides = [1, 1]} : vector<2x128xf32> to vector<2x32xf32>
      %257 = arith.negf %256 : vector<2x32xf32>
      %258 = math.exp %257 : vector<2x32xf32>
      %cst_99 = arith.constant 1.000000e+00 : f32
      %259 = vector.broadcast %cst_99 : f32 to vector<2x32xf32>
      %260 = arith.addf %259, %258 : vector<2x32xf32>
      %261 = arith.divf %259, %260 : vector<2x32xf32>
      %262 = vector.extract_strided_slice %249 {offsets = [0, 64], sizes = [2, 32], strides = [1, 1]} : vector<2x128xf32> to vector<2x32xf32>
      %263 = math.tanh %262 : vector<2x32xf32>
      %264 = vector.extract_strided_slice %249 {offsets = [0, 96], sizes = [2, 32], strides = [1, 1]} : vector<2x128xf32> to vector<2x32xf32>
      %265 = arith.negf %264 : vector<2x32xf32>
      %266 = math.exp %265 : vector<2x32xf32>
      %cst_100 = arith.constant 1.000000e+00 : f32
      %267 = vector.broadcast %cst_100 : f32 to vector<2x32xf32>
      %268 = arith.addf %267, %266 : vector<2x32xf32>
      %269 = arith.divf %267, %268 : vector<2x32xf32>
      %270 = arith.mulf %261, %211 : vector<2x32xf32>
      %271 = arith.mulf %255, %263 : vector<2x32xf32>
      %272 = arith.addf %270, %271 : vector<2x32xf32>
      %273 = math.tanh %272 : vector<2x32xf32>
      %274 = arith.mulf %269, %273 : vector<2x32xf32>
      %275 = arith.truncf %274 : vector<2x32xf32> to vector<2x32xbf16>
      %276 = vector.shape_cast %275 : vector<2x32xbf16> to vector<2x1x32xbf16>
      "tpu.trace_start"() <{level = 10 : i32, message = "bqh,bsh->bqs"}> : () -> ()
      %cst_101 = arith.constant dense<0.000000e+00> : vector<2x1x16xf32>
      %277 = tpu.matmul %276, %46, %cst_101 {dimension_numbers = #tpu.dot_dimension_numbers<[2], [2], [1], [1], [0, 0, 0, 1, 1, 1], [0], [0]>} : vector<2x1x32xbf16>, vector<2x16x32xbf16>, vector<2x1x16xf32> -> vector<2x1x16xf32>
      "tpu.trace_stop"() : () -> ()
      %cst_102 = arith.constant dense<0xFF800000> : vector<2x1xf32>
      %278 = vector.multi_reduction <maximumf>, %277, %cst_102 [2] : vector<2x1x16xf32> to vector<2x1xf32>
      %279 = vector.shape_cast %278 : vector<2x1xf32> to vector<2x1x1xf32>
      %280 = vector.broadcast %279 : vector<2x1x1xf32> to vector<2x1x16xf32>
      %281 = arith.subf %277, %280 : vector<2x1x16xf32>
      %282 = math.exp %281 : vector<2x1x16xf32>
      %cst_103 = arith.constant dense<0.000000e+00> : vector<2x1xf32>
      %283 = vector.multi_reduction <add>, %282, %cst_103 [2] : vector<2x1x16xf32> to vector<2x1xf32>
      %284 = vector.shape_cast %283 : vector<2x1xf32> to vector<2x1x1xf32>
      %285 = tpu.reciprocal %284 {approx = true} : vector<2x1x1xf32> -> vector<2x1x1xf32>
      %286 = vector.broadcast %285 : vector<2x1x1xf32> to vector<2x1x16xf32>
      %287 = arith.mulf %282, %286 : vector<2x1x16xf32>
      %288 = arith.truncf %287 : vector<2x1x16xf32> to vector<2x1x16xbf16>
      "tpu.trace_start"() <{level = 10 : i32, message = "bqs,bsh->bqh"}> : () -> ()
      %cst_104 = arith.constant dense<0.000000e+00> : vector<2x1x32xf32>
      %289 = tpu.matmul %288, %46, %cst_104 {dimension_numbers = #tpu.dot_dimension_numbers<[2], [1], [1], [2], [0, 0, 0, 1, 1, 2], [0], [0]>} : vector<2x1x16xbf16>, vector<2x16x32xbf16>, vector<2x1x32xf32> -> vector<2x1x32xf32>
      "tpu.trace_stop"() : () -> ()
      %290 = vector.shape_cast %289 : vector<2x1x32xf32> to vector<2x32xf32>
      %291 = arith.truncf %274 : vector<2x32xf32> to vector<2x32xbf16>
      %cst_105 = arith.constant dense<0.000000e+00> : vector<2x32xf32>
      %292 = tpu.matmul %291, %49, %cst_105 {dimension_numbers = #tpu.dot_dimension_numbers<[1], [0], [0], [1], [0, 0, 1, 1], [], []>} : vector<2x32xbf16>, vector<32x32xbf16>, vector<2x32xf32> -> vector<2x32xf32>
      %293 = arith.truncf %290 : vector<2x32xf32> to vector<2x32xbf16>
      %cst_106 = arith.constant dense<0.000000e+00> : vector<2x32xf32>
      %294 = tpu.matmul %293, %50, %cst_106 {dimension_numbers = #tpu.dot_dimension_numbers<[1], [0], [0], [1], [0, 0, 1, 1], [], []>} : vector<2x32xbf16>, vector<32x32xbf16>, vector<2x32xf32> -> vector<2x32xf32>
      %295 = arith.addf %292, %294 : vector<2x32xf32>
      %296 = arith.addf %295, %56 : vector<2x32xf32>
      %297 = math.tanh %296 : vector<2x32xf32>
      %298 = arith.truncf %297 : vector<2x32xf32> to vector<2x32xbf16>
      %299 = arith.index_cast %c3_i32_93 : i32 to index
      %c0_107 = arith.constant 0 : index
      %c0_108 = arith.constant 0 : index
      %300 = vector.load %arg18[%299, %c0_107, %c0_108] : memref<4x2x32xbf16, #tpu.memory_space<vmem>>, vector<1x2x32xbf16>
      %301 = vector.shape_cast %300 : vector<1x2x32xbf16> to vector<2x32xbf16>
      %302 = vector.shape_cast %298 : vector<2x32xbf16> to vector<1x2x32xbf16>
      tpu.vector_store %arg18[%299, %c0_107, %c0_108], %302 {strides = array<i32>} : memref<4x2x32xbf16, #tpu.memory_space<vmem>>, vector<1x2x32xbf16>,
      %c4_i32_109 = arith.constant 4 : i32
      %c0_110 = arith.constant 0 : index
      %c0_111 = arith.constant 0 : index
      %303 = vector.load %arg16[%c0_110, %c0_111] : memref<2x32xf32, #tpu.memory_space<vmem>>, vector<2x32xf32>
      tpu.vector_store %arg16[%c0_110, %c0_111], %274 {strides = array<i32>} : memref<2x32xf32, #tpu.memory_space<vmem>>, vector<2x32xf32>,
      %c0_112 = arith.constant 0 : index
      %c0_113 = arith.constant 0 : index
      %304 = vector.load %arg17[%c0_112, %c0_113] : memref<2x32xf32, #tpu.memory_space<vmem>>, vector<2x32xf32>
      tpu.vector_store %arg17[%c0_112, %c0_113], %272 {strides = array<i32>} : memref<2x32xf32, #tpu.memory_space<vmem>>, vector<2x32xf32>,
    } else {
    }
    %c0 = arith.constant 0 : index
    %c0_1 = arith.constant 0 : index
    %3 = vector.load %arg13[%c0, %c0_1] : memref<32x64xbf16, #tpu.memory_space<vmem>>, vector<32x64xbf16>
    %c0_2 = arith.constant 0 : index
    %c0_3 = arith.constant 0 : index
    %4 = vector.load %arg14[%c0_2, %c0_3] : memref<1x64xf32, #tpu.memory_space<vmem>>, vector<1x64xf32>
    %5 = vector.shape_cast %4 : vector<1x64xf32> to vector<1x64xf32>
    %6 = vector.broadcast %5 : vector<1x64xf32> to vector<2x64xf32>
    %c0_i32_4 = arith.constant 0 : i32
    %7 = arith.index_cast %c0_i32_4 : i32 to index
    %c0_5 = arith.constant 0 : index
    %c0_6 = arith.constant 0 : index
    %8 = vector.load %arg18[%7, %c0_5, %c0_6] : memref<4x2x32xbf16, #tpu.memory_space<vmem>>, vector<1x2x32xbf16>
    %9 = vector.shape_cast %8 : vector<1x2x32xbf16> to vector<2x32xbf16>
    %cst = arith.constant dense<0.000000e+00> : vector<2x64xf32>
    %10 = tpu.matmul %9, %3, %cst {dimension_numbers = #tpu.dot_dimension_numbers<[1], [0], [0], [1], [0, 0, 1, 1], [], []>} : vector<2x32xbf16>, vector<32x64xbf16>, vector<2x64xf32> -> vector<2x64xf32>
    %11 = arith.addf %10, %6 : vector<2x64xf32>
    %12 = arith.index_cast %c0_i32_4 : i32 to index
    %c0_7 = arith.constant 0 : index
    %c0_8 = arith.constant 0 : index
    %13 = vector.load %arg15[%12, %c0_7, %c0_8] : memref<4x2x64xf32, #tpu.memory_space<vmem>>, vector<1x2x64xf32>
    %14 = vector.shape_cast %13 : vector<1x2x64xf32> to vector<2x64xf32>
    %15 = vector.shape_cast %11 : vector<2x64xf32> to vector<1x2x64xf32>
    tpu.vector_store %arg15[%12, %c0_7, %c0_8], %15 {strides = array<i32>} : memref<4x2x64xf32, #tpu.memory_space<vmem>>, vector<1x2x64xf32>,
    %c1_i32 = arith.constant 1 : i32
    %16 = arith.index_cast %c1_i32 : i32 to index
    %c0_9 = arith.constant 0 : index
    %c0_10 = arith.constant 0 : index
    %17 = vector.load %arg18[%16, %c0_9, %c0_10] : memref<4x2x32xbf16, #tpu.memory_space<vmem>>, vector<1x2x32xbf16>
    %18 = vector.shape_cast %17 : vector<1x2x32xbf16> to vector<2x32xbf16>
    %cst_11 = arith.constant dense<0.000000e+00> : vector<2x64xf32>
    %19 = tpu.matmul %18, %3, %cst_11 {dimension_numbers = #tpu.dot_dimension_numbers<[1], [0], [0], [1], [0, 0, 1, 1], [], []>} : vector<2x32xbf16>, vector<32x64xbf16>, vector<2x64xf32> -> vector<2x64xf32>
    %20 = arith.addf %19, %6 : vector<2x64xf32>
    %21 = arith.index_cast %c1_i32 : i32 to index
    %c0_12 = arith.constant 0 : index
    %c0_13 = arith.constant 0 : index
    %22 = vector.load %arg15[%21, %c0_12, %c0_13] : memref<4x2x64xf32, #tpu.memory_space<vmem>>, vector<1x2x64xf32>
    %23 = vector.shape_cast %22 : vector<1x2x64xf32> to vector<2x64xf32>
    %24 = vector.shape_cast %20 : vector<2x64xf32> to vector<1x2x64xf32>
    tpu.vector_store %arg15[%21, %c0_12, %c0_13], %24 {strides = array<i32>} : memref<4x2x64xf32, #tpu.memory_space<vmem>>, vector<1x2x64xf32>,
    %c2_i32 = arith.constant 2 : i32
    %25 = arith.index_cast %c2_i32 : i32 to index
    %c0_14 = arith.constant 0 : index
    %c0_15 = arith.constant 0 : index
    %26 = vector.load %arg18[%25, %c0_14, %c0_15] : memref<4x2x32xbf16, #tpu.memory_space<vmem>>, vector<1x2x32xbf16>
    %27 = vector.shape_cast %26 : vector<1x2x32xbf16> to vector<2x32xbf16>
    %cst_16 = arith.constant dense<0.000000e+00> : vector<2x64xf32>
    %28 = tpu.matmul %27, %3, %cst_16 {dimension_numbers = #tpu.dot_dimension_numbers<[1], [0], [0], [1], [0, 0, 1, 1], [], []>} : vector<2x32xbf16>, vector<32x64xbf16>, vector<2x64xf32> -> vector<2x64xf32>
    %29 = arith.addf %28, %6 : vector<2x64xf32>
    %30 = arith.index_cast %c2_i32 : i32 to index
    %c0_17 = arith.constant 0 : index
    %c0_18 = arith.constant 0 : index
    %31 = vector.load %arg15[%30, %c0_17, %c0_18] : memref<4x2x64xf32, #tpu.memory_space<vmem>>, vector<1x2x64xf32>
    %32 = vector.shape_cast %31 : vector<1x2x64xf32> to vector<2x64xf32>
    %33 = vector.shape_cast %29 : vector<2x64xf32> to vector<1x2x64xf32>
    tpu.vector_store %arg15[%30, %c0_17, %c0_18], %33 {strides = array<i32>} : memref<4x2x64xf32, #tpu.memory_space<vmem>>, vector<1x2x64xf32>,
    %c3_i32 = arith.constant 3 : i32
    %34 = arith.index_cast %c3_i32 : i32 to index
    %c0_19 = arith.constant 0 : index
    %c0_20 = arith.constant 0 : index
    %35 = vector.load %arg18[%34, %c0_19, %c0_20] : memref<4x2x32xbf16, #tpu.memory_space<vmem>>, vector<1x2x32xbf16>
    %36 = vector.shape_cast %35 : vector<1x2x32xbf16> to vector<2x32xbf16>
    %cst_21 = arith.constant dense<0.000000e+00> : vector<2x64xf32>
    %37 = tpu.matmul %36, %3, %cst_21 {dimension_numbers = #tpu.dot_dimension_numbers<[1], [0], [0], [1], [0, 0, 1, 1], [], []>} : vector<2x32xbf16>, vector<32x64xbf16>, vector<2x64xf32> -> vector<2x64xf32>
    %38 = arith.addf %37, %6 : vector<2x64xf32>
    %39 = arith.index_cast %c3_i32 : i32 to index
    %c0_22 = arith.constant 0 : index
    %c0_23 = arith.constant 0 : index
    %40 = vector.load %arg15[%39, %c0_22, %c0_23] : memref<4x2x64xf32, #tpu.memory_space<vmem>>, vector<1x2x64xf32>
    %41 = vector.shape_cast %40 : vector<1x2x64xf32> to vector<2x64xf32>
    %42 = vector.shape_cast %38 : vector<2x64xf32> to vector<1x2x64xf32>
    tpu.vector_store %arg15[%39, %c0_22, %c0_23], %42 {strides = array<i32>} : memref<4x2x64xf32, #tpu.memory_space<vmem>>, vector<1x2x64xf32>,
    %c4_i32 = arith.constant 4 : i32
    return
  }
  func.func @transform_0(%arg0: i32, %arg1: i32, %arg2: i32) -> (i32, i32, i32) {
    %c0_i32 = arith.constant 0 : i32
    %c0_i32_0 = arith.constant 0 : i32
    return %arg1, %arg0, %c0_i32 : i32, i32, i32
  }
  func.func @transform_1(%arg0: i32, %arg1: i32, %arg2: i32) -> (i32, i32, i32) {
    %c0_i32 = arith.constant 0 : i32
    %c0_i32_0 = arith.constant 0 : i32
    %c0_i32_1 = arith.constant 0 : i32
    return %arg0, %c0_i32, %c0_i32_0 : i32, i32, i32
  }
  func.func @transform_2(%arg0: i32, %arg1: i32, %arg2: i32) -> (i32, i32) {
    %c0_i32 = arith.constant 0 : i32
    %c0_i32_0 = arith.constant 0 : i32
    return %arg0, %c0_i32 : i32, i32
  }
  func.func @transform_3(%arg0: i32, %arg1: i32, %arg2: i32) -> (i32, i32) {
    %c0_i32 = arith.constant 0 : i32
    %c0_i32_0 = arith.constant 0 : i32
    return %arg0, %c0_i32 : i32, i32
  }
  func.func @transform_4(%arg0: i32, %arg1: i32, %arg2: i32) -> (i32, i32) {
    %c0_i32 = arith.constant 0 : i32
    %c0_i32_0 = arith.constant 0 : i32
    %c0_i32_1 = arith.constant 0 : i32
    return %c0_i32, %c0_i32_0 : i32, i32
  }
  func.func @transform_5(%arg0: i32, %arg1: i32, %arg2: i32) -> (i32, i32) {
    %c0_i32 = arith.constant 0 : i32
    %c0_i32_0 = arith.constant 0 : i32
    %c0_i32_1 = arith.constant 0 : i32
    return %c0_i32, %c0_i32_0 : i32, i32
  }
  func.func @transform_6(%arg0: i32, %arg1: i32, %arg2: i32) -> (i32, i32) {
    %c0_i32 = arith.constant 0 : i32
    %c0_i32_0 = arith.constant 0 : i32
    %c0_i32_1 = arith.constant 0 : i32
    return %c0_i32, %c0_i32_0 : i32, i32
  }
  func.func @transform_7(%arg0: i32, %arg1: i32, %arg2: i32) -> (i32, i32) {
    %c0_i32 = arith.constant 0 : i32
    %c0_i32_0 = arith.constant 0 : i32
    %c0_i32_1 = arith.constant 0 : i32
    return %c0_i32, %c0_i32_0 : i32, i32
  }
  func.func @transform_8(%arg0: i32, %arg1: i32, %arg2: i32) -> (i32, i32) {
    %c0_i32 = arith.constant 0 : i32
    %c0_i32_0 = arith.constant 0 : i32
    %c0_i32_1 = arith.constant 0 : i32
    return %c0_i32, %c0_i32_0 : i32, i32
  }
  func.func @transform_9(%arg0: i32, %arg1: i32, %arg2: i32) -> (i32, i32) {
    %c0_i32 = arith.constant 0 : i32
    %c0_i32_0 = arith.constant 0 : i32
    %c0_i32_1 = arith.constant 0 : i32
    return %c0_i32, %c0_i32_0 : i32, i32
  }
  func.func @transform_10(%arg0: i32, %arg1: i32, %arg2: i32) -> (i32, i32) {
    %c0_i32 = arith.constant 0 : i32
    %c0_i32_0 = arith.constant 0 : i32
    return %c0_i32, %arg2 : i32, i32
  }
  func.func @transform_11(%arg0: i32, %arg1: i32, %arg2: i32) -> (i32, i32) {
    %c0_i32 = arith.constant 0 : i32
    %c0_i32_0 = arith.constant 0 : i32
    return %c0_i32, %arg2 : i32, i32
  }
  func.func @transform_12(%arg0: i32, %arg1: i32, %arg2: i32) -> (i32, i32, i32) {
    %c0_i32 = arith.constant 0 : i32
    return %arg1, %arg0, %arg2 : i32, i32, i32
  }
  func.func @transform_13(%arg0: i32, %arg1: i32, %arg2: i32) -> (i32, i32) {
    %c0_i32 = arith.constant 0 : i32
    %c0_i32_0 = arith.constant 0 : i32
    return %arg0, %c0_i32 : i32, i32
  }
  func.func @transform_14(%arg0: i32, %arg1: i32, %arg2: i32) -> (i32, i32) {
    %c0_i32 = arith.constant 0 : i32
    %c0_i32_0 = arith.constant 0 : i32
    return %arg0, %c0_i32 : i32, i32
  }
}

</mosaic_0001>

<bundles_post_ra>
// kernel: tpu_custom_call.1
= control target key start
LH: loop header
LB: loop body
LE: loop exit
PB: predicated region body
PF: predicated region fallthrough
CT: control target
= control target key end

     0   :  { %s4932_s0 = inlined_call_operand.hbm [shape: bf16[8,2,32], index: 0, kind: input, shape index: {}]   ;;  %s4933_s1 = inlined_call_operand.hbm [shape: bf16[2,16,32], index: 1, kind: input, shape index: {}]   ;;  %s4934_s2 = inlined_call_operand.vmem [shape: f32[2,32], index: 2, kind: input, shape index: {}]   ;;  %s4935_s3 = inlined_call_operand.hbm [shape: f32[2,32], index: 3, kind: input, shape index: {}]   ;;  %s4936_s4 = inlined_call_operand.hbm [shape: bf16[32,128], index: 4, kind: input, shape index: {}]   ;;  %s4937_s5 = inlined_call_operand.hbm [shape: bf16[32,128], index: 5, kind: input, shape index: {}]   ;;  %s4938_s6 = inlined_call_operand.hbm [shape: f32[1,128], index: 6, kind: input, shape index: {}]   ;;  %s4939_s7 = inlined_call_operand.hbm [shape: bf16[32,32], index: 7, kind: input, shape index: {}]   ;;  %s4940_s8 = inlined_call_operand.hbm [shape: bf16[32,32], index: 8, kind: input, shape index: {}]   ;;  %s4941_s9 = inlined_call_operand.hbm [shape: f32[1,32], index: 9, kind: input, shape index: {}]   ;;  %s4942_s10 = inlined_call_operand.vmem [shape: bf16[32,64], index: 10, kind: input, shape index: {}]   ;;  %s4943_s11 = inlined_call_operand.vmem [shape: f32[1,64], index: 11, kind: input, shape index: {}]   ;;  %s4944_s12 = inlined_call_operand.hbm [shape: f32[8,2,64], index: 12, kind: output, shape index: {0}]   ;;  %s4945_s13 = inlined_call_operand.hbm [shape: f32[2,32], index: 13, kind: output, shape index: {1}]   ;;  %s4946_s14 = inlined_call_operand.hbm [shape: f32[2,32], index: 14, kind: output, shape index: {2}]  }
   0x1   :  { %4954 = sst [smem:[#allocation29_spill]] %s4933_s1 }
   0x2   :  { %4955 = sst [smem:[#allocation30_spill]] %s4935_s3 }
   0x3   :  { %4956 = sst [smem:[#allocation31_spill]] %s4936_s4 }
   0x4   :  { %4957 = sst [smem:[#allocation32_spill]] %s4937_s5 }
   0x5   :  { %4958 = sst [smem:[#allocation33_spill]] %s4938_s6 }
   0x6   :  { %4959 = sst [smem:[#allocation34_spill]] %s4939_s7 }
   0x7   :  { %4960 = sst [smem:[#allocation35_spill]] %s4940_s8 }
   0x8   :  { %4961 = sst [smem:[#allocation36_spill]] %s4941_s9 }
   0x9   :  { %4962 = sst [smem:[#allocation37_spill]] %s4943_s11 }
   0xa   :  { %4963 = sst [smem:[#allocation38_spill]] %s4944_s12 }
   0xb   :  { %4964 = sst [smem:[#allocation39_spill]] %s4945_s13 }
   0xc   :  { %4965 = sst [smem:[#allocation40_spill]] %s4946_s14 }
   0xd   :  { %20 = vsyncpa [#allocation4], 0 }
   0xe   :  { %22 = vsyncpa [#allocation4 + $0x1], 0 }
   0xf   :  { %23 = vsyncpa [#allocation7], 0 }
  0x10   :  { %24 = vsyncpa [#allocation10], 0 }
  0x11   :  { %25 = vsyncpa [#allocation13], 0 }
  0x12   :  { %26 = vsyncpa [#allocation16], 0 }
  0x13   :  { %27 = vsyncpa [#allocation5], 0 }
  0x14   :  { %29 = vsyncpa [#allocation5 + $0x1], 0 }
  0x15   :  { %30 = vsyncpa [#allocation20], 0  ;;  %s4272_s29 = smov 0   ;;  %s4274_s30 = smov 0  }
  0x16   :  { %s4276_s15 = smov 0   ;;  %s4278_s16 = smov 0  }
  0x17   :  { %s4280_s17 = smov 0   ;;  %s4282_s18 = smov 0  }
  0x18 LB: > { %s4947_s19 = sadd.s32 4294967295, %s4172_s18   ;;  %p3084_p0 = scmp.ge.s32.totalorder %s4172_s18, 1  ;;  %s4172_s18 = sphi %s4282_s18, %s36_s18   ;;  %s4168_s17 = sphi %s4280_s17, %s4998_s17   ;;  %s4164_s16 = sphi %s4278_s16, %s4997_s16   ;;  %s4160_s15 = sphi %s4276_s15, %s4996_s15   ;;  %s4156_s30 = sphi %s4274_s30, %s4995_s30   ;;  %s4152_s29 = sphi %s4272_s29, %s4994_s29  }
  0x19   : > { %p4306_p1 = scmp.eq.s32.totalorder %s4947_s19, 0  ;;  %p426_p2 = scmp.lt.s32.totalorder %s4172_s18, 3 }
  0x1a   : > { %s4174_s22 = smov [#allocation6]   ;;  %s4175_s25 = smov [#allocation9]  }
  0x1b   : > { %p4311_p3 = pnand %p3084_p0, %p426_p2  ;;  %s442_s23 = sshll.u32 %s4174_s22, 4  ;;  %s443_s23 = int_to_ptr.vmem [resolvable:$true] %s442_s23 }
  0x1c   : > { %s475_s26 = sshll.u32 %s4175_s25, 4  ;;  %s4176_s27 = smov [#allocation12]   ;;  %s476_s26 = int_to_ptr.vmem [resolvable:$true] %s475_s26 }
  0x1d   : > { %p3580_p4 = pneg %p4311_p3  ;;  %s502_s28 = sshll.u32 %s4176_s27, 4  ;;  %s503_s28 = int_to_ptr.vmem [resolvable:$true] %s502_s28 }
  0x1e   : > { %s3799_s22 = scalar_lea.vmem %s443_s23, 256  ;;  %p3807_p11 = scmp.lt.s32.totalorder %s443_s23, %s443_s23 }
  0x1f   : > { %p4320_p6 = pnand %p3580_p4, %p4306_p1  ;;  %p3800_p8 = scmp.ne.s32.totalorder %s443_s23, %s3799_s22 }
  0x20   : > { %p3808_p12 = scmp.lt.s32.totalorder %s3799_s22, %s3799_s22 }
  0x21   : > { %p4326_p7 = pneg %p4320_p6 }
  0x22   : > { %p3809_p13 = por %p3808_p12, %p3807_p11 }
  0x23   : > { %p3802_p9 = pnand %p3800_p8, %p4326_p7 }
  0x25   : > { %p3803_p10 = pneg %p3802_p9 }
  0x27   : > { %p3810_p0 = pnand %p3809_p13, %p3803_p10 }
  0x29   : > { %3813 = shalt.err (!%p3810_p0)
}
  0x2a   : > { %s4949_s25 = smov 64   ;;  %s4951_s27 = smov 4  }
  0x2b   : > { %s4970_s1 = sld [smem:[#allocation29_spill]]  ;;  %s3825_s13 = scalar_lea.vmem %s476_s26, 256 }
  0x2c   : > { %p3826_p2 = scmp.ne.s32.totalorder %s476_s26, %s3825_s13  ;;  %p3833_p9 = scmp.lt.s32.totalorder %s476_s26, %s476_s26 }
  0x2d   : > { %p3834_p10 = scmp.lt.s32.totalorder %s3825_s13, %s3825_s13 }
  0x2e   : > { %p3828_p4 = pnand %p3826_p2, %p4326_p7 }
  0x2f   : > { %p3835_p11 = por %p3834_p10, %p3833_p9 }
  0x30   : > { %p3829_p8 = pneg %p3828_p4 }
  0x31   : > { %3583 = dma.hbm_to_vmem [thread:$0]  (!%p4320_p6), %s4970_s1, 256, %s443_s23, [#allocation7], %s4949_s25, %s4949_s25, %s4951_s27  }
  0x32   : > { %p3836_p12 = pnand %p3835_p11, %p3829_p8 }
  0x34   : > { %3839 = shalt.err (!%p3836_p12)
}
  0x35   : > { %s4971_s4 = sld [smem:[#allocation31_spill]]  ;;  %s3851_s12 = scalar_lea.vmem %s503_s28, 16 }
  0x36   : > { %p3852_p13 = scmp.ne.s32.totalorder %s503_s28, %s3851_s12  ;;  %s3858_s13 = scalar_lea.vmem %s503_s28, 32 }
  0x37   : > { %p3859_p4 = scmp.lt.s32.totalorder %s503_s28, %s503_s28  ;;  %p3860_p8 = scmp.lt.s32.totalorder %s3858_s13, %s3851_s12 }
  0x38   : > { %p3854_p0 = pnand %p3852_p13, %p4326_p7 }
  0x39   : > { %p3861_p9 = por %p3860_p8, %p3859_p4 }
  0x3a   : > { %p3855_p2 = pneg %p3854_p0 }
  0x3b   : > { %3589 = dma.hbm_to_vmem [thread:$0]  (!%p4320_p6), %s4971_s4, 256, %s476_s26, [#allocation10], %s4949_s25, %s4949_s25, %s4951_s27  }
  0x3c   : > { %p3862_p10 = pnand %p3861_p9, %p3855_p2 }
  0x3e   : > { %3865 = shalt.err (!%p3862_p10)
}
  0x3f   : > { %s4972_s6 = sld [smem:[#allocation33_spill]]  ;;  %s4179_s11 = smov [#allocation15]  }
  0x40   : > { %s525_s26 = sshll.u32 %s4179_s11, 4  ;;  %s4180_s22 = smov [#allocation8]   ;;  %s526_s26 = int_to_ptr.vmem [resolvable:$true] %s525_s26 }
  0x41   : > { %s465_s25 = sshll.u32 %s4180_s22, 4  ;;  %s3877_s27 = scalar_lea.vmem %s526_s26, 256  ;;  %s466_s25 = int_to_ptr.vmem [resolvable:$true] %s465_s25 }
  0x42   : > { %p3878_p11 = scmp.ne.s32.totalorder %s526_s26, %s3877_s27  ;;  %p3885_p0 = scmp.lt.s32.totalorder %s526_s26, %s526_s26 }
  0x43   : > { %p3886_p2 = scmp.lt.s32.totalorder %s3877_s27, %s3877_s27 }
  0x44   : > { %p3880_p12 = pnand %p3878_p11, %p4326_p7 }
  0x45   : > { %3595 = dma.hbm_to_vmem [thread:$0]  (!%p4320_p6), %s4972_s6, 16, %s503_s28, [#allocation13]  }
  0x46   : > { %p3881_p13 = pneg %p3880_p12  ;;  %p3887_p4 = por %p3886_p2, %p3885_p0 }
  0x48   : > { %p3888_p8 = pnand %p3887_p4, %p3881_p13 }
  0x4a   : > { %3891 = shalt.err (!%p3888_p8)
}
  0x4b   : > { %s4973_s12 = smov 4   ;;  %s4974_s13 = smov 64  }
  0x4c   : > { %s4975_s8 = sld [smem:[#allocation35_spill]]  ;;  %s3903_s23 = scalar_lea.vmem %s466_s25, 32 }
  0x4d   : > { %p3904_p9 = scmp.ne.s32.totalorder %s466_s25, %s3903_s23  ;;  %p3911_p12 = scmp.lt.s32.totalorder %s466_s25, %s466_s25 }
  0x4e   : > { %p3912_p0 = scmp.lt.s32.totalorder %s3903_s23, %s3903_s23 }
  0x4f   : > { %p3906_p10 = pnand %p3904_p9, %p4326_p7 }
  0x50   : > { %p3913_p13 = por %p3912_p0, %p3911_p12 }
  0x51   : > { %p3907_p11 = pneg %p3906_p10 }
  0x52   : > { %3601 = dma.hbm_to_vmem [thread:$0]  (!%p4320_p6), %s4975_s8, 256, %s526_s26, [#allocation16], %s4974_s13, %s4974_s13, %s4973_s12  }
  0x53   : > { %p3914_p2 = pnand %p3913_p13, %p3907_p11 }
  0x55   : > { %3917 = shalt.err (!%p3914_p2)
}
  0x56   : > { %s4976_s3 = sld [smem:[#allocation30_spill]]  ;;  %s4181_s22 = smov [#allocation11]  }
  0x57   : > { %s488_s26 = sshll.u32 %s4181_s22, 4  ;;  %s4182_s28 = smov [#allocation14]   ;;  %s489_s26 = int_to_ptr.vmem [resolvable:$true] %s488_s26 }
  0x58   : > { %s512_s14 = sshll.u32 %s4182_s28, 4  ;;  %s3929_s1 = scalar_lea.vmem %s489_s26, 256  ;;  %s513_s14 = int_to_ptr.vmem [resolvable:$true] %s512_s14 }
  0x59   : > { %p3930_p4 = scmp.ne.s32.totalorder %s489_s26, %s3929_s1  ;;  %p3937_p10 = scmp.lt.s32.totalorder %s489_s26, %s489_s26 }
  0x5a   : > { %p3938_p11 = scmp.lt.s32.totalorder %s3929_s1, %s3929_s1 }
  0x5b   : > { %p3932_p8 = pnand %p3930_p4, %p4326_p7 }
  0x5c   : > { %3586 = dma.hbm_to_vmem [thread:$0]  (!%p4320_p6), %s4976_s3, 32, %s466_s25, [#allocation7]  }
  0x5d   : > { %p3933_p9 = pneg %p3932_p8  ;;  %p3939_p12 = por %p3938_p11, %p3937_p10 }
  0x5f   : > { %p3940_p0 = pnand %p3939_p12, %p3933_p9 }
  0x61   : > { %3943 = shalt.err (!%p3940_p0)
}
  0x62   : > { %s4977_s5 = sld [smem:[#allocation32_spill]]  ;;  %s3955_s27 = scalar_lea.vmem %s513_s14, 256 }
  0x63   : > { %p3956_p13 = scmp.ne.s32.totalorder %s513_s14, %s3955_s27  ;;  %p3963_p8 = scmp.lt.s32.totalorder %s513_s14, %s513_s14 }
  0x64   : > { %p3964_p10 = scmp.lt.s32.totalorder %s3955_s27, %s3955_s27 }
  0x65   : > { %p3958_p2 = pnand %p3956_p13, %p4326_p7 }
  0x66   : > { %p3965_p9 = por %p3964_p10, %p3963_p8 }
  0x67   : > { %p3959_p4 = pneg %p3958_p2 }
  0x68   : > { %3592 = dma.hbm_to_vmem [thread:$0]  (!%p4320_p6), %s4977_s5, 256, %s489_s26, [#allocation10], %s4974_s13, %s4974_s13, %s4973_s12  }
  0x69   : > { %p3966_p11 = pnand %p3965_p9, %p3959_p4 }
  0x6b   : > { %3969 = shalt.err (!%p3966_p11)
}
  0x6c   : > { %s4978_s7 = sld [smem:[#allocation34_spill]]  ;;  %s4183_s22 = smov [#allocation17]  }
  0x6d   : > { %s539_s26 = sshll.u32 %s4183_s22, 4  ;;  %s540_s26 = int_to_ptr.vmem [resolvable:$true] %s539_s26 }
  0x6e   : > { %s3981_s28 = scalar_lea.vmem %s540_s26, 16  ;;  %s3988_s25 = scalar_lea.vmem %s540_s26, 32 }
  0x6f   : > { %p3982_p12 = scmp.ne.s32.totalorder %s540_s26, %s3981_s28  ;;  %p3989_p2 = scmp.lt.s32.totalorder %s540_s26, %s540_s26 }
  0x70   : > { %p3990_p4 = scmp.lt.s32.totalorder %s3988_s25, %s3981_s28 }
  0x71   : > { %p3984_p0 = pnand %p3982_p12, %p4326_p7 }
  0x72   : > { %3598 = dma.hbm_to_vmem [thread:$0]  (!%p4320_p6), %s4978_s7, 256, %s513_s14, [#allocation13], %s4974_s13, %s4974_s13, %s4973_s12  }
  0x73   : > { %p3985_p13 = pneg %p3984_p0  ;;  %p3991_p8 = por %p3990_p4, %p3989_p2 }
  0x75   : > { %p3992_p10 = pnand %p3991_p8, %p3985_p13 }
  0x77   : > { %3995 = shalt.err (!%p3992_p10)
}
  0x78   : > { %s4979_s9 = sld [smem:[#allocation36_spill]]  ;;  %s3083_s19 = sadd.s32 4294967294, %s4172_s18  }
  0x79   : > { %s51_s12 = sadd.s32 1, %s4168_s17  ;;  %s64_s24 = sadd.s32 1, %s4160_s15 }
  0x7a   : > { %p53_p7 = scmp.ge.s32.totalorder %s51_s12, 2  ;;  %p71_p9 = scmp.ne.s32.totalorder %s4160_s15, %s4156_s30 }
  0x7b   : > { %p72_p11 = scmp.eq.s32.totalorder %s4172_s18, 0  ;;  %p77_p0 = scmp.ne.s32.totalorder %s4156_s30, %s4152_s29 }
  0x7c   : > { %s5000_s12 = smov (%p53_p7, %s51_s12), 0  ;;  %s4981_s1 = sadd.s32 4294967295, %s4172_s18  }
  0x7d   : > { %p4409_p12 = por %p72_p11, %p71_p9  ;;  %s59_s14 = ssub.s32 %s4168_s17, %s5000_s12 }
  0x7e   : > { %3604 = dma.hbm_to_vmem [thread:$0]  (!%p4320_p6), %s4979_s9, 16, %s540_s26, [#allocation16]  }
  0x7f   : > { %p4419_p6 = scmp.eq.s32.totalorder %s4981_s1, 1  ;;  %p62_p13 = scmp.eq.s32.totalorder %s59_s14, 0 }
  0x80   : > { %p4425_p2 = por %p4306_p1, %p77_p0  ;;  %p367_p8 = scmp.eq.s32.totalorder %s3083_s19, 1 }
  0x81   : > { %p4431_p4 = por %p4419_p6, %p71_p9  ;;  %p3621_p7 = scmp.lt.s32.totalorder %s4172_s18, 2 }
  0x82   : > { %s4436_s28 = scalar_select %p62_p13, %s4160_s15, %s64_s24  }
  0x83   : > { %s4984_s26 = scalar_select %p4431_p4, 1, 0 }
  0x84   : > { %p4438_p10 = por %p367_p8, %p77_p0  ;;  %s563_s23 = sand.u32 1, %s4160_s15  }
  0x85   : > { %s3186_s27 = sshll.u32 %s4168_s17, 6  ;;  %s3097_s14 = sshll.u32 %s563_s23, 2 }
  0x86   : > { %s4985_s25 = scalar_select %p4438_p10, 1, 0 }
  0x87   : > { %s574_s4 = scalar_lea.hbm %s4932_s0, %s3186_s27  ;;  %s567_s5 = scalar_lea.vmem [#allocation3], %s3097_s14 }
  0x88   : > { %s575_s6 = sshll.u32 %s567_s5, 4  ;;  %p4450_p9 = pnand %p3621_p7, %p4409_p12  ;;  %s576_s6 = int_to_ptr.vmem [resolvable:$true] %s575_s6 }
  0x89   : > { %s564_s19 = scalar_lea.sflag [#allocation4], %s563_s23  ;;  %s4009_s24 = scalar_lea.vmem %s576_s6, 64 }
  0x8a   : > { %p3998_p11 = pneg %p4450_p9  ;;  %p4010_p0 = scmp.ne.s32.totalorder %s576_s6, %s4009_s24 }
  0x8b   : > { %s4184_s8 = smov [#allocation3]  }
  0x8c   : > { %p4012_p13 = pnand %p4010_p0, %p3998_p11  ;;  %s4014_s9 = sshll.u32 %s4184_s8, 4  ;;  %s4015_s9 = int_to_ptr.vmem [resolvable:$false] %s4014_s9 }
  0x8d   : > { %s4016_s3 = scalar_lea.vmem %s4015_s9, 128  ;;  %p4017_p5 = scmp.lt.s32.totalorder %s576_s6, %s4015_s9 }
  0x8e   : > { %p4013_p8 = pneg %p4012_p13  ;;  %p4018_p10 = scmp.lt.s32.totalorder %s4016_s3, %s4009_s24 }
  0x90   : > { %p4019_p4 = por %p4018_p10, %p4017_p5 }
  0x92   : > { %p4020_p12 = pnand %p4019_p4, %p4013_p8 }
  0x94   : > { %4023 = shalt.err (!%p4020_p12)
}
  0x95   : > { %s4185_s5 = smov 16   ;;  %s4186_s13 = smov 1  }
  0x96   : > { %3608 = dma.hbm_to_vmem [thread:$0]  (!%p4450_p9), %s574_s4, 64, %s576_s6, %s564_s19, %s4185_s5, %s4185_s5, %s4186_s13  }
  0x97   : > { %587 = sbr.rel (%p4311_p3) target bundleno = 6297 (0x1899), region = 68  ;;  %s4461_s23 = sand.u32 (!%p4311_p3), 1, %s4156_s30  }
  0x98   : > { %s3101_s8 = sshll.u32 (!%p4311_p3), %s4461_s23, 2  ;;  %s590_s9 = scalar_lea.sflag (!%p4311_p3), [#allocation4], %s4461_s23 }
  0x99   : > { %s4465_s27 = scalar_lea.vmem (!%p4311_p3), [#allocation3], %s3101_s8 }
  0x9c   : > { %4123 = dma.done.wait (%p4425_p2), %s590_s9, 64  }
  0x9d   : > { %4125 = vsyncadd (%p4425_p2), %s590_s9, 4294967232 }
  0x9e   : > { %4127 = dma.done.wait (%p4306_p1), [#allocation7], 288  }
  0x9f   : > { %4129 = vsyncadd (%p4306_p1), [#allocation7], 4294967008 }
  0xa0   : > { %4131 = dma.done.wait (%p4306_p1), [#allocation10], 512  }
  0xa1   : > { %4133 = vsyncadd (%p4306_p1), [#allocation10], 4294966784 }
  0xa2   : > { %4135 = dma.done.wait (%p4306_p1), [#allocation13], 272  }
  0xa3   : > { %4137 = vsyncadd (%p4306_p1), [#allocation13], 4294967024 }
  0xa4   : > { %4139 = dma.done.wait (%p4306_p1), [#allocation16], 272  }
  0xa5   : > { %4141 = vsyncadd (%p4306_p1), [#allocation16], 4294967024  ;;  %s3110_s4 = sshll.u32 %s4461_s23, 3  ;;  %p3111_p3 = scmp.ne.s32.totalorder %s4164_s16, 0 }
  0xa6   : > { %s4488_s6 = scalar_lea.vmem [#allocation18], %s3110_s4 }
  0xa7   : > { %703 = sbr.rel (%p3111_p3) target bundleno = 174 (0xae), region = 112 }
  0xac   : > { %v704_v0 = vld [vmem:[%s4934_s2] sm:$0x3]  ;;  %vm705_vm0 = vcmask 254976   ;;  %v707_v1 = vld [vmem:[#allocation8] sm:$0x3] }
  0xad   : > { %706 = vst.msk [vmem:[#allocation19] sm:$0x3] %vm705_vm0, %v704_v0  ;;  %708 = vst.msk [vmem:[#allocation21] sm:$0x3] %vm705_vm0, %v707_v1 }
  0xae PF: > { %v4494_v2 = vld [vmem:[#allocation11 + $0x8] sm:$0xff]   ;;  %v4187_v3 = vmov 0.0   ;;  %v4498_v4 = vld [vmem:[#allocation9 + $0x8] sm:$0xff]   ;;  %v4501_v5 = vld [vmem:[#allocation11] sm:$0xff]   ;;  %vm4188_vm1 = vmmov 0   ;;  %vm759_vm2 = vcmask 261120   ;;  %v892_v40 = vlaneseq }
  0xaf   : > { %3280 = vmatprep.subr.bf16.mxu0 %v4187_v3  ;;  %3288 = vmatprep.subr.bf16.mxu1 %v4187_v3  ;;  %v4507_v6 = vld [vmem:[#allocation9] sm:$0xff]   ;;  %s4189_s20 = smov 64   ;;  %s4190_s22 = smov 32   ;;  %v4533_v34 = vld [vmem:[#allocation6] sm:$0xff]   ;;  %v4535_v35 = vld [vmem:[#allocation6 + $0x8] sm:$0xff]   ;;  %vm1021_vm3 = vcmask 122880  }
  0xb0   : > { %3281 = vmatpush3.bf16.msra.mxu0 %v4494_v2  ;;  %3284 = vmatprep.mubr.msk.bf16.mxu0 %vm4188_vm1, %v4187_v3  ;;  %v745_v9 = vld [vmem:[%s4465_s27] sm:$0x1]  ;;  %v4523_v11 = vld [vmem:[#allocation12] ss:$0 sm:$0xff]  ;;  %v4539_v36 = vsel %vm759_vm2, %v4533_v34, 0  ;;  %v4543_v37 = vsel %vm759_vm2, %v4535_v35, 0 }
  0xb1   : > { %3289 = vmatpush3.bf16.msra.mxu1 %v4498_v4  ;;  %3282 = vmatprep.subr.bf16.mxu0 %v4187_v3  ;;  %v4191_v38 = vmov 1966171168   ;;  %v893_v42 = vshrl.u32 %v892_v40, 7  ;;  %vm1047_vm4 = vcmask 130048   ;;  %vm1142_vm5 = vcmask 1041409   ;;  %s4192_s14 = smov 96  }
  0xb2   : > { %3290 = vmatprep.subr.bf16.mxu1 %v4187_v3  ;;  %3292 = vmatprep.mubr.msk.bf16.mxu1 %vm4188_vm1, %v4187_v3  ;;  %v890_v39 = vunpack.c.l.s4 %v4191_v38  ;;  %vm1260_vm6 = vcmask 253952   ;;  %vm2586_vm7 = vcmask 254976   ;;  %s4987_s8 = sld [smem:[#allocation37_spill]]  ;;  %vm2661_vm8 = vcmask 517120   ;;  %s4193_s9 = smov [#allocation19]  }
  0xb3   : > { %v4553_v49 = vsub.s32 0, %v893_v42 }
  0xb4   : > { %v743_v7 = vld [vmem:[#allocation19] sm:$0x3]  ;;  %3283 = vmatpush3.bf16.msra.mxu0 %v4501_v5  ;;  %v744_v22 = vld [vmem:[#allocation21] sm:$0x3]  ;;  %v891_v41 = vunpack.c.0.s8 %v890_v39 }
  0xb5   : > { %v746_v8 = vpack.c.bf16 %v743_v7, %v743_v7  ;;  %3291 = vmatpush3.bf16.msra.mxu1 %v4507_v6  ;;  %3296 = vmatprep.subr.bf16.mxu0 %v4187_v3 }
  0xb6   : > { %3302 = vmatprep.subr.bf16.mxu1 %v4187_v3  ;;  %v4549_v44 = vsub.s32 %v891_v41, %v893_v42 }
  0xb7   : > { %3285 = vmatmul.mubr.msk.bf16.vlgmr.msra.gmra.mxu0 %vm759_vm2, %v746_v8 }
  0xb8   : > { %3293 = vmatmul.mubr.msk.bf16.vlgmr.msra.gmra.mxu1 %vm759_vm2, %v745_v9  ;;  %3298 = vmatprep.mubr.msk.bf16.mxu0 %vm4188_vm1, %v4187_v3 }
  0xb9   : > { %3304 = vmatprep.mubr.msk.bf16.mxu1 %vm4188_vm1, %v4187_v3  ;;  %3297 = vmatpush3.bf16.xpose.msra.mxu0 %v4539_v36 }
  0xba   : > { %3303 = vmatpush3.bf16.xpose.msra.mxu1 %v4543_v37  ;;  %3308 = vmatprep.subr.bf16.mxu0 %v4187_v3 }
  0xbb   : > { %3314 = vmatprep.subr.bf16.mxu1 %v4187_v3 }
 0x177   : > { %v797_v10 = vpop.f32.mrf.mxu0 }
 0x178   : > { %v852_v12 = vpop.f32.mrf.mxu1 }
 0x179   : > { %v853_v13 = vadd.f32 %v852_v12, %v797_v10  ;;  %v3286_v14 = vpop.f32.mrf.mxu0 }
 0x17a   : > { %v3294_v15 = vpop.f32.mrf.mxu1 }
 0x17b   : > { %v858_v16 = vadd.f32 %v4523_v11, %v853_v13  ;;  %v800_v17 = vpop.f32.mrf.mxu0 }
 0x17c   : > { %v855_v18 = vpop.f32.mrf.mxu1 }
 0x17d   : > { %3716 = vtanh.f32 %v858_v16  ;;  %v3287_v19 = vpop.f32.mrf.mxu0  ;;  %v3120_v23 = vmul.f32 -1.442695, %v858_v16 }
 0x17e   : > { %v3295_v20 = vpop.f32.mrf.mxu1 }
 0x17f   : > { %3718 = vpow2.f32 %v3120_v23  ;;  %v4574_v23 = vld [vmem:[#allocation14 + $0x8] sm:$0xff]  }
 0x18a   : > { %v3717_v21 = vpop.eup %3716 }
 0x18b   : > { %872 = vrot.lane.b32.xlu0 %v3717_v21, %s4189_s20 }
 0x18c   : > { %v3719_v24 = vpop.eup %3718 }
 0x18d   : > { %v862_v25 = vadd.f32 1.0, %v3719_v24 }
 0x18f   : > { %867 = vrot.lane.b32.xlu0 %v744_v22, %s4190_s22  ;;  %3720 = vrcp.f32 %v862_v25 }
 0x19c   : > { %v3721_v26 = vpop.eup %3720 }
 0x1fd   : > { %v873_v27 = vpop.permute.xlu0 %872 }
 0x1fe   : > { %v875_v28 = vmul.f32 %v3721_v26, %v873_v27  ;;  %v4578_v27 = vld [vmem:[#allocation14] sm:$0xff]  }
 0x200   : > { %877 = vrot.lane.b32.xlu1 %v875_v28, %s4190_s22 }
 0x201   : > { %v868_v29 = vpop.permute.xlu0 %867 }
 0x202   : > { %v870_v30 = vmul.f32 %v3721_v26, %v868_v29 }
 0x272   : > { %v878_v31 = vpop.permute.xlu1 %877 }
 0x273   : > { %v4529_v32 = vadd.f32 %v878_v31, %v870_v30  ;;  %v4595_v30 = vld [vmem:[#allocation15 + $0x8] sm:$0xff]   ;;  %v4599_v31 = vld [vmem:[#allocation15] sm:$0xff]  }
 0x275   : > { %3722 = vtanh.f32 %v4529_v32 }
 0x282   : > { %v3723_v33 = vpop.eup %3722 }
 0x283   : > { %883 = vrot.lane.b32.xlu1 %v3723_v33, %s4189_s20  ;;  %v3134_v33 = vld [vmem:[%s4465_s27 + $0x1] sm:$0x1] }
 0x2f5   : > { %v884_v43 = vpop.permute.xlu1 %883 }
 0x2f6   : > { %v886_v45 = vmul.f32 %v3721_v26, %v884_v43 }
 0x2f8   : > { %v887_v46 = vpack.c.bf16 %v886_v45, %v886_v45 }
 0x2fa   : > { %v895_v47 = vrot.slane %v887_v46, %v4549_v44 }
 0x2fc   : > { %v902_v48 = vrot.slane %v895_v47, %v4549_v44 }
 0x2fe   : > { %v3121_v50 = vpack.i.b16 %v902_v48, %v902_v48  ;;  %v904_v51 = vunpack.i.h.s16 %v902_v48 }
 0x300   : > { %v909_v52 = vrot.slane %v3121_v50, %v4553_v49  ;;  %v963_v53 = vpack.i.b16 %v904_v51, %v904_v51 }
 0x302   : > { %910 = vrot.lane.b32.xlu1 %v909_v52, %s4190_s22  ;;  %v967_v54 = vrot.slane %v963_v53, %v4553_v49 }
 0x304   : > { %968 = vrot.lane.b32.xlu0 %v967_v54, %s4190_s22 }
 0x374   : > { %v911_v55 = vpop.permute.xlu1 %910 }
 0x375   : > { %3299 = vmatmul.mubr.msk.bf16.vlgmr.msra.gmra.mxu0 %vm759_vm2, %v911_v55 }
 0x376   : > { %v969_v56 = vpop.permute.xlu0 %968  ;;  %3309 = vmatpush3.bf16.msra.mxu0 %v4533_v34  ;;  %3310 = vmatprep.mubr.msk.bf16.mxu0 %vm4188_vm1, %v4187_v3 }
 0x377   : > { %3305 = vmatmul.mubr.msk.bf16.vlgmr.msra.gmra.mxu1 %vm759_vm2, %v969_v56  ;;  %3320 = vmatprep.subr.bf16.mxu0 %v4187_v3 }
 0x378   : > { %3315 = vmatpush3.bf16.msra.mxu1 %v4535_v35  ;;  %3316 = vmatprep.mubr.msk.bf16.mxu1 %vm4188_vm1, %v4187_v3 }
 0x379   : > { %3328 = vmatprep.subr.bf16.mxu1 %v4187_v3 }
 0x435   : > { %v957_v57 = vpop.f32.mrf.mxu0 }
 0x436   : > { %v1022_v58 = vsel %vm1021_vm3, %v957_v57, -inf }
 0x437   : > { %v1015_v59 = vpop.f32.mrf.mxu1  ;;  %1023 = vmax.xlane.f32.xlu1 %v1022_v58  ;;  %v3300_v60 = vpop.f32.mrf.mxu0 }
 0x438   : > { %v1025_v61 = vsel %vm1021_vm3, %v1015_v59, -inf }
 0x439   : > { %1026 = vmax.xlane.f32.xlu0 %v1025_v61  ;;  %v960_v62 = vpop.f32.mrf.mxu0  ;;  %v3306_v63 = vpop.f32.mrf.mxu1 }
 0x43a   : > { %v4622_v63 = vld [vmem:[#allocation17] ss:$0 sm:$0xff] }
 0x43b   : > { %v3301_v0 = vpop.f32.mrf.mxu0  ;;  %v1018_v1 = vpop.f32.mrf.mxu1 }
 0x43d   : > { %v3307_v7 = vpop.f32.mrf.mxu1 }
 0x448   : > { %1200 = vrot.lane.b32.xlu1 %v887_v46, %s4190_s22 }
 0x4c0   : > { %v1024_v8 = vpop.xlane.xlu1 %1023 }
 0x4c1   : > { %v1028_v9 = vsub.f32 %v957_v57, %v1024_v8 }
 0x4c2   : > { %v1027_v10 = vpop.xlane.xlu0 %1026 }
 0x4c3   : > { %v1029_v12 = vsub.f32 %v1015_v59, %v1027_v10  ;;  %v1030_v13 = vmul.f32 1.442695, %v1028_v9 }
 0x4c4   : > { %v1201_v29 = vpop.permute.xlu1 %1200 }
 0x4c5   : > { %v1032_v14 = vmul.f32 1.442695, %v1029_v12 }
 0x4c7   : > { %3724 = vpow2.f32 %v1032_v14 }
 0x4c8   : > { %3726 = vpow2.f32 %v1030_v13 }
 0x4d4   : > { %v3725_v15 = vpop.eup %3724 }
 0x4d5   : > { %v1037_v16 = vsel %vm1021_vm3, %v3725_v15, 0.0  ;;  %v3727_v17 = vpop.eup %3726 }
 0x4d6   : > { %1038 = vadd.xlane.f32.xlu0 %v1037_v16  ;;  %v1034_v18 = vsel %vm1021_vm3, %v3727_v17, 0.0 }
 0x4da   : > { %1035 = vadd.xlane.f32.xlu0 %v1034_v18 }
 0x55f   : > { %v1039_v19 = vpop.xlane.xlu0 %1038 }
 0x560   : > { %3728 = vrcp.f32 %v1039_v19 }
 0x563   : > { %v1036_v20 = vpop.xlane.xlu0 %1035 }
 0x564   : > { %3730 = vrcp.f32 %v1036_v20 }
 0x56d   : > { %v3729_v21 = vpop.eup %3728 }
 0x56e   : > { %v1043_v22 = vmul.f32 %v3729_v21, %v3725_v15 }
 0x570   : > { %v1045_v24 = vpack.c.bf16 %v1043_v22, %v1043_v22 }
 0x571   : > { %v3731_v25 = vpop.eup %3730 }
 0x572   : > { %3317 = vmatmul.mubr.msk.bf16.vlgmr.msra.gmra.mxu1 %vm1047_vm4, %v1045_v24  ;;  %v1042_v26 = vmul.f32 %v3731_v25, %v3727_v17 }
 0x573   : > { %3329 = vmatpush3.bf16.msra.mxu1 %v4574_v23  ;;  %3332 = vmatprep.mubr.msk.bf16.mxu1 %vm4188_vm1, %v4187_v3 }
 0x574   : > { %v1044_v28 = vpack.c.bf16 %v1042_v26, %v1042_v26  ;;  %3330 = vmatprep.subr.bf16.mxu1 %v4187_v3 }
 0x576   : > { %3311 = vmatmul.mubr.msk.bf16.vlgmr.msra.gmra.mxu0 %vm1047_vm4, %v1044_v28 }
 0x577   : > { %3331 = vmatpush3.bf16.msra.mxu1 %v4578_v27  ;;  %3324 = vmatprep.mubr.msk.bf16.mxu0 %vm4188_vm1, %v4187_v3 }
 0x578   : > { %3344 = vmatprep.subr.bf16.mxu1 %v4187_v3  ;;  %3321 = vmatpush3.bf16.msra.mxu0 %v4595_v30 }
 0x579   : > { %3322 = vmatprep.subr.bf16.mxu0 %v4187_v3 }
 0x57a   : > { %3333 = vmatmul.mubr.msk.bf16.vlgmr.msra.gmra.mxu1 %vm759_vm2, %v1201_v29 }
 0x57b   : > { %3345 = vmatpush3.bf16.msra.mxu1 %v4498_v4  ;;  %3348 = vmatprep.mubr.msk.bf16.mxu1 %vm4188_vm1, %v4187_v3 }
 0x57c   : > { %3346 = vmatprep.subr.bf16.mxu1 %v4187_v3  ;;  %3323 = vmatpush3.bf16.msra.mxu0 %v4599_v31 }
 0x57d   : > { %3336 = vmatprep.subr.bf16.mxu0 %v4187_v3 }
 0x57f   : > { %3347 = vmatpush3.bf16.msra.mxu1 %v4507_v6 }
 0x580   : > { %3358 = vmatprep.subr.bf16.mxu1 %v4187_v3 }
 0x582   : > { %3349 = vmatmul.mubr.msk.bf16.vlgmr.msra.gmra.mxu1 %vm759_vm2, %v3134_v33 }
 0x583   : > { %3359 = vmatpush3.bf16.xpose.msra.mxu1 %v4543_v37  ;;  %3360 = vmatprep.mubr.msk.bf16.mxu1 %vm4188_vm1, %v4187_v3 }
 0x584   : > { %3370 = vmatprep.subr.bf16.mxu1 %v4187_v3 }
 0x632   : > { %v1129_v38 = vpop.f32.mrf.mxu1 }
 0x633   : > { %v1136_v39 = vpack.c.bf16 %v1129_v38, %v1129_v38 }
 0x634   : > { %v3318_v40 = vpop.f32.mrf.mxu1 }
 0x635   : > { %v1140_v41 = vunpack.c.l.b16 %v1136_v39 }
 0x636   : > { %v1085_v42 = vpop.f32.mrf.mxu0  ;;  %v1132_v43 = vpop.f32.mrf.mxu1 }
 0x637   : > { %v1135_v45 = vpack.c.bf16 %v1085_v42, %v1085_v42  ;;  %v1141_v48 = vrot.slane %v1140_v41, 7 }
 0x638   : > { %v3312_v46 = vpop.f32.mrf.mxu0  ;;  %v3319_v47 = vpop.f32.mrf.mxu1 }
 0x639   : > { %v1139_v50 = vunpack.c.l.b16 %v1135_v45 }
 0x63a   : > { %v1088_v51 = vpop.f32.mrf.mxu0  ;;  %v1251_v52 = vpop.f32.mrf.mxu1 }
 0x63b   : > { %v1143_v53 = vsel %vm1142_vm5, %v1141_v48, %v1139_v50 }
 0x63c   : > { %v1144_v54 = vpack.c.b16 %v1143_v53, %v1143_v53  ;;  %v3313_v55 = vpop.f32.mrf.mxu0  ;;  %v3334_v56 = vpop.f32.mrf.mxu1 }
 0x63e   : > { %3325 = vmatmul.mubr.msk.bf16.vlgmr.msra.gmra.mxu0 %vm759_vm2, %v1144_v54  ;;  %v1254_v57 = vpop.f32.mrf.mxu1 }
 0x63f   : > { %3337 = vmatpush3.bf16.msra.mxu0 %v4494_v2  ;;  %3340 = vmatprep.mubr.msk.bf16.mxu0 %vm4188_vm1, %v4187_v3 }
 0x640   : > { %v3335_v58 = vpop.f32.mrf.mxu1  ;;  %3338 = vmatprep.subr.bf16.mxu0 %v4187_v3 }
 0x642   : > { %v1341_v59 = vpop.f32.mrf.mxu1 }
 0x643   : > { %3339 = vmatpush3.bf16.msra.mxu0 %v4501_v5 }
 0x644   : > { %3352 = vmatprep.subr.bf16.mxu0 %v4187_v3  ;;  %v3350_v60 = vpop.f32.mrf.mxu1 }
 0x646   : > { %3341 = vmatmul.mubr.msk.bf16.vlgmr.msra.gmra.mxu0 %vm759_vm2, %v1201_v29  ;;  %v1344_v61 = vpop.f32.mrf.mxu1 }
 0x647   : > { %3353 = vmatpush3.bf16.xpose.msra.mxu0 %v4539_v36  ;;  %3354 = vmatprep.mubr.msk.bf16.mxu0 %vm4188_vm1, %v4187_v3 }
 0x648   : > { %3364 = vmatprep.subr.bf16.mxu0 %v4187_v3  ;;  %v3351_v62 = vpop.f32.mrf.mxu1 }
 0x6fe   : > { %v1194_v0 = vpop.f32.mrf.mxu0 }
 0x6ff   : > { %v1252_v1 = vadd.f32 %v1251_v52, %v1194_v0 }
 0x700   : > { %v3326_v7 = vpop.f32.mrf.mxu0 }
 0x701   : > { %v1257_v8 = vadd.f32 %v4622_v63, %v1252_v1 }
 0x702   : > { %v1197_v9 = vpop.f32.mrf.mxu0 }
 0x703   : > { %3732 = vtanh.f32 %v1257_v8 }
 0x704   : > { %v3327_v10 = vpop.f32.mrf.mxu0 }
 0x706   : > { %v1298_v12 = vpop.f32.mrf.mxu0 }
 0x707   : > { %v1342_v13 = vadd.f32 %v1341_v59, %v1298_v12 }
 0x708   : > { %v3342_v14 = vpop.f32.mrf.mxu0 }
 0x709   : > { %v1347_v15 = vadd.f32 %v4523_v11, %v1342_v13 }
 0x70a   : > { %v1301_v16 = vpop.f32.mrf.mxu0 }
 0x70b   : > { %3734 = vtanh.f32 %v1347_v15  ;;  %v3137_v21 = vmul.f32 -1.442695, %v1347_v15 }
 0x70c   : > { %v3343_v17 = vpop.f32.mrf.mxu0 }
 0x70d   : > { %3736 = vpow2.f32 %v3137_v21 }
 0x710   : > { %v3733_v18 = vpop.eup %3732 }
 0x711   : > { %v1259_v19 = vpack.c.bf16 %v3733_v18, %v3733_v18 }
 0x713   : > { %1261 = vst.msk [vmem:[#allocation2] sm:$0x1] %vm1260_vm6, %v1259_v19 }
 0x718   : > { %v3735_v20 = vpop.eup %3734 }
 0x719   : > { %1357 = vrot.lane.b32.xlu0 %v3735_v20, %s4189_s20 }
 0x71a   : > { %v3737_v22 = vpop.eup %3736 }
 0x71b   : > { %v1351_v24 = vadd.f32 1.0, %v3737_v22 }
 0x71d   : > { %3738 = vrcp.f32 %v1351_v24 }
 0x72a   : > { %v3739_v25 = vpop.eup %3738 }
 0x72b   : > { %v1355_v29 = vmul.f32 %v3739_v25, %v4529_v32 }
 0x78b   : > { %v1358_v26 = vpop.permute.xlu0 %1357 }
 0x78c   : > { %v1360_v28 = vmul.f32 %v3739_v25, %v1358_v26  ;;  %v3145_v26 = vld [vmem:[%s4465_s27 + $0x2] sm:$0x1] }
 0x78e   : > { %1362 = vrot.lane.b32.xlu1 %v1360_v28, %s4190_s22 }
 0x800   : > { %v1363_v33 = vpop.permute.xlu1 %1362 }
 0x801   : > { %v4630_v38 = vadd.f32 %v1363_v33, %v1355_v29 }
 0x803   : > { %3740 = vtanh.f32 %v4630_v38 }
 0x810   : > { %v3741_v39 = vpop.eup %3740 }
 0x811   : > { %1368 = vrot.lane.b32.xlu1 %v3741_v39, %s4189_s20 }
 0x883   : > { %v1369_v40 = vpop.permute.xlu1 %1368 }
 0x884   : > { %v1371_v41 = vmul.f32 %v3739_v25, %v1369_v40 }
 0x886   : > { %v1372_v42 = vpack.c.bf16 %v1371_v41, %v1371_v41 }
 0x888   : > { %v1380_v43 = vrot.slane %v1372_v42, %v4549_v44 }
 0x88a   : > { %v1387_v45 = vrot.slane %v1380_v43, %v4549_v44 }
 0x88c   : > { %v3138_v46 = vpack.i.b16 %v1387_v45, %v1387_v45  ;;  %v1389_v47 = vunpack.i.h.s16 %v1387_v45 }
 0x88e   : > { %v1394_v48 = vrot.slane %v3138_v46, %v4553_v49  ;;  %v1440_v32 = vpack.i.b16 %v1389_v47, %v1389_v47 }
 0x890   : > { %1395 = vrot.lane.b32.xlu1 %v1394_v48, %s4190_s22  ;;  %v1444_v50 = vrot.slane %v1440_v32, %v4553_v49 }
 0x892   : > { %1445 = vrot.lane.b32.xlu0 %v1444_v50, %s4190_s22 }
 0x902   : > { %v1396_v51 = vpop.permute.xlu1 %1395 }
 0x903   : > { %3355 = vmatmul.mubr.msk.bf16.vlgmr.msra.gmra.mxu0 %vm759_vm2, %v1396_v51 }
 0x904   : > { %v1446_v52 = vpop.permute.xlu0 %1445  ;;  %3365 = vmatpush3.bf16.msra.mxu0 %v4533_v34  ;;  %3366 = vmatprep.mubr.msk.bf16.mxu0 %vm4188_vm1, %v4187_v3 }
 0x905   : > { %3361 = vmatmul.mubr.msk.bf16.vlgmr.msra.gmra.mxu1 %vm759_vm2, %v1446_v52  ;;  %3376 = vmatprep.subr.bf16.mxu0 %v4187_v3 }
 0x906   : > { %3371 = vmatpush3.bf16.msra.mxu1 %v4535_v35  ;;  %3372 = vmatprep.mubr.msk.bf16.mxu1 %vm4188_vm1, %v4187_v3 }
 0x907   : > { %3384 = vmatprep.subr.bf16.mxu1 %v4187_v3 }
 0x9c3   : > { %v1434_v53 = vpop.f32.mrf.mxu0 }
 0x9c4   : > { %v1490_v54 = vsel %vm1021_vm3, %v1434_v53, -inf }
 0x9c5   : > { %v1484_v55 = vpop.f32.mrf.mxu1  ;;  %1491 = vmax.xlane.f32.xlu1 %v1490_v54  ;;  %v3356_v56 = vpop.f32.mrf.mxu0 }
 0x9c6   : > { %v1493_v57 = vsel %vm1021_vm3, %v1484_v55, -inf }
 0x9c7   : > { %1494 = vmax.xlane.f32.xlu0 %v1493_v57  ;;  %v1437_v58 = vpop.f32.mrf.mxu0  ;;  %v3362_v59 = vpop.f32.mrf.mxu1 }
 0x9c9   : > { %v3357_v60 = vpop.f32.mrf.mxu0  ;;  %v1487_v61 = vpop.f32.mrf.mxu1 }
 0x9cb   : > { %v3363_v62 = vpop.f32.mrf.mxu1 }
 0x9d6   : > { %1652 = vrot.lane.b32.xlu1 %v1372_v42, %s4190_s22 }
 0xa4e   : > { %v1492_v0 = vpop.xlane.xlu1 %1491 }
 0xa4f   : > { %v1496_v1 = vsub.f32 %v1434_v53, %v1492_v0 }
 0xa50   : > { %v1495_v7 = vpop.xlane.xlu0 %1494 }
 0xa51   : > { %v1497_v8 = vsub.f32 %v1484_v55, %v1495_v7  ;;  %v1498_v9 = vmul.f32 1.442695, %v1496_v1 }
 0xa52   : > { %v1653_v25 = vpop.permute.xlu1 %1652 }
 0xa53   : > { %v1500_v10 = vmul.f32 1.442695, %v1497_v8 }
 0xa55   : > { %3742 = vpow2.f32 %v1500_v10 }
 0xa56   : > { %3744 = vpow2.f32 %v1498_v9 }
 0xa62   : > { %v3743_v12 = vpop.eup %3742 }
 0xa63   : > { %v1505_v13 = vsel %vm1021_vm3, %v3743_v12, 0.0  ;;  %v3745_v14 = vpop.eup %3744 }
 0xa64   : > { %1506 = vadd.xlane.f32.xlu0 %v1505_v13  ;;  %v1502_v15 = vsel %vm1021_vm3, %v3745_v14, 0.0 }
 0xa68   : > { %1503 = vadd.xlane.f32.xlu0 %v1502_v15 }
 0xaed   : > { %v1507_v16 = vpop.xlane.xlu0 %1506 }
 0xaee   : > { %3746 = vrcp.f32 %v1507_v16 }
 0xaf1   : > { %v1504_v17 = vpop.xlane.xlu0 %1503 }
 0xaf2   : > { %3748 = vrcp.f32 %v1504_v17 }
 0xafb   : > { %v3747_v18 = vpop.eup %3746 }
 0xafc   : > { %v1511_v19 = vmul.f32 %v3747_v18, %v3743_v12 }
 0xafe   : > { %v1513_v20 = vpack.c.bf16 %v1511_v19, %v1511_v19 }
 0xaff   : > { %v3749_v21 = vpop.eup %3748 }
 0xb00   : > { %3373 = vmatmul.mubr.msk.bf16.vlgmr.msra.gmra.mxu1 %vm1047_vm4, %v1513_v20  ;;  %v1510_v22 = vmul.f32 %v3749_v21, %v3745_v14 }
 0xb01   : > { %3385 = vmatpush3.bf16.msra.mxu1 %v4574_v23  ;;  %3388 = vmatprep.mubr.msk.bf16.mxu1 %vm4188_vm1, %v4187_v3 }
 0xb02   : > { %v1512_v24 = vpack.c.bf16 %v1510_v22, %v1510_v22  ;;  %3386 = vmatprep.subr.bf16.mxu1 %v4187_v3 }
 0xb04   : > { %3367 = vmatmul.mubr.msk.bf16.vlgmr.msra.gmra.mxu0 %vm1047_vm4, %v1512_v24 }
 0xb05   : > { %3387 = vmatpush3.bf16.msra.mxu1 %v4578_v27  ;;  %3377 = vmatpush3.bf16.msra.mxu0 %v4595_v30 }
 0xb06   : > { %3400 = vmatprep.subr.bf16.mxu1 %v4187_v3  ;;  %3378 = vmatprep.subr.bf16.mxu0 %v4187_v3 }
 0xb07   : > { %3380 = vmatprep.mubr.msk.bf16.mxu0 %vm4188_vm1, %v4187_v3 }
 0xb08   : > { %3389 = vmatmul.mubr.msk.bf16.vlgmr.msra.gmra.mxu1 %vm759_vm2, %v1653_v25 }
 0xb09   : > { %3401 = vmatpush3.bf16.msra.mxu1 %v4498_v4  ;;  %3379 = vmatpush3.bf16.msra.mxu0 %v4599_v31 }
 0xb0a   : > { %3402 = vmatprep.subr.bf16.mxu1 %v4187_v3  ;;  %3392 = vmatprep.subr.bf16.mxu0 %v4187_v3 }
 0xb0b   : > { %3404 = vmatprep.mubr.msk.bf16.mxu1 %vm4188_vm1, %v4187_v3 }
 0xb0d   : > { %3403 = vmatpush3.bf16.msra.mxu1 %v4507_v6 }
 0xb0e   : > { %3414 = vmatprep.subr.bf16.mxu1 %v4187_v3 }
 0xb10   : > { %3405 = vmatmul.mubr.msk.bf16.vlgmr.msra.gmra.mxu1 %vm759_vm2, %v3145_v26 }
 0xb11   : > { %3415 = vmatpush3.bf16.xpose.msra.mxu1 %v4543_v37  ;;  %3416 = vmatprep.mubr.msk.bf16.mxu1 %vm4188_vm1, %v4187_v3 }
 0xb12   : > { %3426 = vmatprep.subr.bf16.mxu1 %v4187_v3 }
 0xbc0   : > { %v1594_v28 = vpop.f32.mrf.mxu1 }
 0xbc1   : > { %v1601_v29 = vpack.c.bf16 %v1594_v28, %v1594_v28 }
 0xbc2   : > { %v3374_v33 = vpop.f32.mrf.mxu1 }
 0xbc3   : > { %v1605_v39 = vunpack.c.l.b16 %v1601_v29 }
 0xbc4   : > { %v1551_v40 = vpop.f32.mrf.mxu0  ;;  %v1597_v41 = vpop.f32.mrf.mxu1 }
 0xbc5   : > { %v1600_v42 = vpack.c.bf16 %v1551_v40, %v1551_v40  ;;  %v1606_v46 = vrot.slane %v1605_v39, 7 }
 0xbc6   : > { %v3368_v43 = vpop.f32.mrf.mxu0  ;;  %v3375_v45 = vpop.f32.mrf.mxu1 }
 0xbc7   : > { %v1604_v47 = vunpack.c.l.b16 %v1600_v42 }
 0xbc8   : > { %v1554_v48 = vpop.f32.mrf.mxu0  ;;  %v1691_v32 = vpop.f32.mrf.mxu1 }
 0xbc9   : > { %v1607_v50 = vsel %vm1142_vm5, %v1606_v46, %v1604_v47 }
 0xbca   : > { %v1608_v51 = vpack.c.b16 %v1607_v50, %v1607_v50  ;;  %v3369_v52 = vpop.f32.mrf.mxu0  ;;  %v3390_v53 = vpop.f32.mrf.mxu1 }
 0xbcc   : > { %3381 = vmatmul.mubr.msk.bf16.vlgmr.msra.gmra.mxu0 %vm759_vm2, %v1608_v51  ;;  %v1694_v54 = vpop.f32.mrf.mxu1 }
 0xbcd   : > { %3393 = vmatpush3.bf16.msra.mxu0 %v4494_v2  ;;  %3396 = vmatprep.mubr.msk.bf16.mxu0 %vm4188_vm1, %v4187_v3 }
 0xbce   : > { %v3391_v55 = vpop.f32.mrf.mxu1  ;;  %3394 = vmatprep.subr.bf16.mxu0 %v4187_v3 }
 0xbd0   : > { %v1781_v56 = vpop.f32.mrf.mxu1 }
 0xbd1   : > { %3395 = vmatpush3.bf16.msra.mxu0 %v4501_v5 }
 0xbd2   : > { %3408 = vmatprep.subr.bf16.mxu0 %v4187_v3  ;;  %v3406_v57 = vpop.f32.mrf.mxu1 }
 0xbd4   : > { %3397 = vmatmul.mubr.msk.bf16.vlgmr.msra.gmra.mxu0 %vm759_vm2, %v1653_v25  ;;  %v1784_v58 = vpop.f32.mrf.mxu1 }
 0xbd5   : > { %3409 = vmatpush3.bf16.xpose.msra.mxu0 %v4539_v36  ;;  %3410 = vmatprep.mubr.msk.bf16.mxu0 %vm4188_vm1, %v4187_v3 }
 0xbd6   : > { %3420 = vmatprep.subr.bf16.mxu0 %v4187_v3  ;;  %v3407_v59 = vpop.f32.mrf.mxu1 }
 0xc8c   : > { %v1646_v60 = vpop.f32.mrf.mxu0 }
 0xc8d   : > { %v1692_v61 = vadd.f32 %v1691_v32, %v1646_v60 }
 0xc8e   : > { %v3382_v62 = vpop.f32.mrf.mxu0 }
 0xc8f   : > { %v1697_v0 = vadd.f32 %v4622_v63, %v1692_v61 }
 0xc90   : > { %v1649_v1 = vpop.f32.mrf.mxu0 }
 0xc91   : > { %3750 = vtanh.f32 %v1697_v0 }
 0xc92   : > { %v3383_v7 = vpop.f32.mrf.mxu0 }
 0xc94   : > { %v1738_v8 = vpop.f32.mrf.mxu0 }
 0xc95   : > { %v1782_v9 = vadd.f32 %v1781_v56, %v1738_v8 }
 0xc96   : > { %v3398_v10 = vpop.f32.mrf.mxu0 }
 0xc97   : > { %v1787_v12 = vadd.f32 %v4523_v11, %v1782_v9 }
 0xc98   : > { %v1741_v13 = vpop.f32.mrf.mxu0 }
 0xc99   : > { %3752 = vtanh.f32 %v1787_v12  ;;  %v3148_v18 = vmul.f32 -1.442695, %v1787_v12 }
 0xc9a   : > { %v3399_v14 = vpop.f32.mrf.mxu0 }
 0xc9b   : > { %3754 = vpow2.f32 %v3148_v18 }
 0xc9e   : > { %v3751_v15 = vpop.eup %3750 }
 0xc9f   : > { %v1699_v16 = vpack.c.bf16 %v3751_v15, %v3751_v15 }
 0xca1   : > { %1701 = vst.msk [vmem:[#allocation2 + $0x1] sm:$0x1] %vm1260_vm6, %v1699_v16 }
 0xca6   : > { %v3753_v17 = vpop.eup %3752 }
 0xca7   : > { %1797 = vrot.lane.b32.xlu0 %v3753_v17, %s4189_s20 }
 0xca8   : > { %v3755_v19 = vpop.eup %3754 }
 0xca9   : > { %v1791_v20 = vadd.f32 1.0, %v3755_v19 }
 0xcab   : > { %3756 = vrcp.f32 %v1791_v20 }
 0xcb8   : > { %v3757_v21 = vpop.eup %3756 }
 0xcb9   : > { %v1795_v25 = vmul.f32 %v3757_v21, %v4630_v38 }
 0xd19   : > { %v1798_v22 = vpop.permute.xlu0 %1797 }
 0xd1a   : > { %v1800_v24 = vmul.f32 %v3757_v21, %v1798_v22  ;;  %v3156_v22 = vld [vmem:[%s4465_s27 + $0x3] sm:$0x1]  ;;  %s2836_s27 = sshll.u32 %s4193_s9, 4  ;;  %s2837_s27 = int_to_ptr.vmem [resolvable:$true] %s2836_s27 }
 0xd1b   : > { %s4024_s4 = scalar_lea.vmem %s2837_s27, 32  ;;  %p4031_p4 = scmp.lt.s32.totalorder %s2837_s27, %s2837_s27 }
 0xd1c   : > { %1802 = vrot.lane.b32.xlu1 %v1800_v24, %s4190_s22  ;;  %p4025_p1 = scmp.ne.s32.totalorder %s2837_s27, %s4024_s4  ;;  %p4032_p10 = scmp.lt.s32.totalorder %s4024_s4, %s4024_s4 }
 0xd1e   : > { %p4026_p5 = pnand %p4025_p1, %p4419_p6  ;;  %p4033_p7 = por %p4032_p10, %p4031_p4 }
 0xd20   : > { %p4027_p2 = pneg %p4026_p5 }
 0xd22   : > { %p4034_p9 = pnand %p4033_p7, %p4027_p2 }
 0xd8e   : > { %v1803_v26 = vpop.permute.xlu1 %1802 }
 0xd8f   : > { %v4701_v28 = vadd.f32 %v1803_v26, %v1795_v25 }
 0xd91   : > { %3758 = vtanh.f32 %v4701_v28 }
 0xd9e   : > { %v3759_v29 = vpop.eup %3758 }
 0xd9f   : > { %1808 = vrot.lane.b32.xlu1 %v3759_v29, %s4189_s20 }
 0xe11   : > { %v1809_v33 = vpop.permute.xlu1 %1808 }
 0xe12   : > { %v1811_v39 = vmul.f32 %v3757_v21, %v1809_v33 }
 0xe14   : > { %v1812_v40 = vpack.c.bf16 %v1811_v39, %v1811_v39 }
 0xe16   : > { %v1820_v41 = vrot.slane %v1812_v40, %v4549_v44 }
 0xe18   : > { %v1827_v42 = vrot.slane %v1820_v41, %v4549_v44 }
 0xe1a   : > { %v3149_v43 = vpack.i.b16 %v1827_v42, %v1827_v42  ;;  %v1829_v45 = vunpack.i.h.s16 %v1827_v42 }
 0xe1c   : > { %v1834_v46 = vrot.slane %v3149_v43, %v4553_v49  ;;  %v1880_v38 = vpack.i.b16 %v1829_v45, %v1829_v45 }
 0xe1e   : > { %1835 = vrot.lane.b32.xlu1 %v1834_v46, %s4190_s22  ;;  %v1884_v47 = vrot.slane %v1880_v38, %v4553_v49 }
 0xe20   : > { %1885 = vrot.lane.b32.xlu0 %v1884_v47, %s4190_s22 }
 0xe90   : > { %v1836_v48 = vpop.permute.xlu1 %1835 }
 0xe91   : > { %3411 = vmatmul.mubr.msk.bf16.vlgmr.msra.gmra.mxu0 %vm759_vm2, %v1836_v48 }
 0xe92   : > { %v1886_v32 = vpop.permute.xlu0 %1885  ;;  %3421 = vmatpush3.bf16.msra.mxu0 %v4533_v34  ;;  %3422 = vmatprep.mubr.msk.bf16.mxu0 %vm4188_vm1, %v4187_v3 }
 0xe93   : > { %3417 = vmatmul.mubr.msk.bf16.vlgmr.msra.gmra.mxu1 %vm759_vm2, %v1886_v32  ;;  %3432 = vmatprep.subr.bf16.mxu0 %v4187_v3 }
 0xe94   : > { %3427 = vmatpush3.bf16.msra.mxu1 %v4535_v35  ;;  %3428 = vmatprep.mubr.msk.bf16.mxu1 %vm4188_vm1, %v4187_v3 }
 0xe95   : > { %3440 = vmatprep.subr.bf16.mxu1 %v4187_v3 }
 0xf51   : > { %v1874_v50 = vpop.f32.mrf.mxu0 }
 0xf52   : > { %v1930_v51 = vsel %vm1021_vm3, %v1874_v50, -inf }
 0xf53   : > { %v1924_v52 = vpop.f32.mrf.mxu1  ;;  %1931 = vmax.xlane.f32.xlu1 %v1930_v51  ;;  %v3412_v53 = vpop.f32.mrf.mxu0 }
 0xf54   : > { %v1933_v54 = vsel %vm1021_vm3, %v1924_v52, -inf }
 0xf55   : > { %1934 = vmax.xlane.f32.xlu0 %v1933_v54  ;;  %v1877_v55 = vpop.f32.mrf.mxu0  ;;  %v3418_v56 = vpop.f32.mrf.mxu1 }
 0xf57   : > { %v3413_v57 = vpop.f32.mrf.mxu0  ;;  %v1927_v58 = vpop.f32.mrf.mxu1 }
 0xf59   : > { %v3419_v59 = vpop.f32.mrf.mxu1 }
 0xf64   : > { %2092 = vrot.lane.b32.xlu1 %v1812_v40, %s4190_s22 }
 0xfdc   : > { %v1932_v60 = vpop.xlane.xlu1 %1931 }
 0xfdd   : > { %v1936_v61 = vsub.f32 %v1874_v50, %v1932_v60 }
 0xfde   : > { %v1935_v62 = vpop.xlane.xlu0 %1934 }
 0xfdf   : > { %v1937_v0 = vsub.f32 %v1924_v52, %v1935_v62  ;;  %v1938_v1 = vmul.f32 1.442695, %v1936_v61 }
 0xfe0   : > { %v2093_v21 = vpop.permute.xlu1 %2092 }
 0xfe1   : > { %v1940_v7 = vmul.f32 1.442695, %v1937_v0 }
 0xfe3   : > { %3760 = vpow2.f32 %v1940_v7 }
 0xfe4   : > { %3762 = vpow2.f32 %v1938_v1 }
 0xff0   : > { %v3761_v8 = vpop.eup %3760 }
 0xff1   : > { %v1945_v9 = vsel %vm1021_vm3, %v3761_v8, 0.0  ;;  %v3763_v10 = vpop.eup %3762 }
 0xff2   : > { %1946 = vadd.xlane.f32.xlu0 %v1945_v9  ;;  %v1942_v12 = vsel %vm1021_vm3, %v3763_v10, 0.0 }
 0xff6   : > { %1943 = vadd.xlane.f32.xlu0 %v1942_v12 }
0x107b   : > { %v1947_v13 = vpop.xlane.xlu0 %1946 }
0x107c   : > { %3764 = vrcp.f32 %v1947_v13 }
0x107f   : > { %v1944_v14 = vpop.xlane.xlu0 %1943 }
0x1080   : > { %3766 = vrcp.f32 %v1944_v14 }
0x1089   : > { %v3765_v15 = vpop.eup %3764 }
0x108a   : > { %v1951_v16 = vmul.f32 %v3765_v15, %v3761_v8 }
0x108c   : > { %v1953_v17 = vpack.c.bf16 %v1951_v16, %v1951_v16 }
0x108d   : > { %v3767_v18 = vpop.eup %3766 }
0x108e   : > { %3429 = vmatmul.mubr.msk.bf16.vlgmr.msra.gmra.mxu1 %vm1047_vm4, %v1953_v17  ;;  %v1950_v19 = vmul.f32 %v3767_v18, %v3763_v10 }
0x108f   : > { %3441 = vmatpush3.bf16.msra.mxu1 %v4574_v23  ;;  %3444 = vmatprep.mubr.msk.bf16.mxu1 %vm4188_vm1, %v4187_v3 }
0x1090   : > { %v1952_v20 = vpack.c.bf16 %v1950_v19, %v1950_v19  ;;  %3442 = vmatprep.subr.bf16.mxu1 %v4187_v3 }
0x1092   : > { %3423 = vmatmul.mubr.msk.bf16.vlgmr.msra.gmra.mxu0 %vm1047_vm4, %v1952_v20 }
0x1093   : > { %3443 = vmatpush3.bf16.msra.mxu1 %v4578_v27  ;;  %3433 = vmatpush3.bf16.msra.mxu0 %v4595_v30 }
0x1094   : > { %3456 = vmatprep.subr.bf16.mxu1 %v4187_v3  ;;  %3434 = vmatprep.subr.bf16.mxu0 %v4187_v3 }
0x1095   : > { %3436 = vmatprep.mubr.msk.bf16.mxu0 %vm4188_vm1, %v4187_v3 }
0x1096   : > { %3445 = vmatmul.mubr.msk.bf16.vlgmr.msra.gmra.mxu1 %vm759_vm2, %v2093_v21 }
0x1097   : > { %3457 = vmatpush3.bf16.msra.mxu1 %v4498_v4  ;;  %3435 = vmatpush3.bf16.msra.mxu0 %v4599_v31 }
0x1098   : > { %3458 = vmatprep.subr.bf16.mxu1 %v4187_v3  ;;  %3448 = vmatprep.subr.bf16.mxu0 %v4187_v3 }
0x1099   : > { %3460 = vmatprep.mubr.msk.bf16.mxu1 %vm4188_vm1, %v4187_v3 }
0x109b   : > { %3459 = vmatpush3.bf16.msra.mxu1 %v4507_v6 }
0x109c   : > { %3470 = vmatprep.subr.bf16.mxu1 %v4187_v3 }
0x109e   : > { %3461 = vmatmul.mubr.msk.bf16.vlgmr.msra.gmra.mxu1 %vm759_vm2, %v3156_v22 }
0x109f   : > { %3471 = vmatpush3.bf16.xpose.msra.mxu1 %v4543_v37  ;;  %3472 = vmatprep.mubr.msk.bf16.mxu1 %vm4188_vm1, %v4187_v3 }
0x10a0   : > { %3482 = vmatprep.subr.bf16.mxu1 %v4187_v3 }
0x114e   : > { %v2034_v4 = vpop.f32.mrf.mxu1 }
0x114f   : > { %v2041_v24 = vpack.c.bf16 %v2034_v4, %v2034_v4 }
0x1150   : > { %v3430_v25 = vpop.f32.mrf.mxu1 }
0x1151   : > { %v2045_v26 = vunpack.c.l.b16 %v2041_v24 }
0x1152   : > { %v1991_v29 = vpop.f32.mrf.mxu0  ;;  %v2037_v33 = vpop.f32.mrf.mxu1 }
0x1153   : > { %v2040_v39 = vpack.c.bf16 %v1991_v29, %v1991_v29  ;;  %v2046_v41 = vrot.slane %v2045_v26, 7 }
0x1154   : > { %v3424_v6 = vpop.f32.mrf.mxu0  ;;  %v3431_v40 = vpop.f32.mrf.mxu1 }
0x1155   : > { %v2044_v42 = vunpack.c.l.b16 %v2040_v39 }
0x1156   : > { %v1994_v43 = vpop.f32.mrf.mxu0  ;;  %v2131_v45 = vpop.f32.mrf.mxu1 }
0x1157   : > { %v2047_v37 = vsel %vm1142_vm5, %v2046_v41, %v2044_v42 }
0x1158   : > { %v2048_v46 = vpack.c.b16 %v2047_v37, %v2047_v37  ;;  %v3425_v38 = vpop.f32.mrf.mxu0  ;;  %v3446_v47 = vpop.f32.mrf.mxu1 }
0x115a   : > { %3437 = vmatmul.mubr.msk.bf16.vlgmr.msra.gmra.mxu0 %vm759_vm2, %v2048_v46  ;;  %v2134_v48 = vpop.f32.mrf.mxu1 }
0x115b   : > { %3449 = vmatpush3.bf16.msra.mxu0 %v4494_v2  ;;  %3452 = vmatprep.mubr.msk.bf16.mxu0 %vm4188_vm1, %v4187_v3 }
0x115c   : > { %v3447_v32 = vpop.f32.mrf.mxu1  ;;  %3450 = vmatprep.subr.bf16.mxu0 %v4187_v3 }
0x115e   : > { %v2221_v2 = vpop.f32.mrf.mxu1 }
0x115f   : > { %3451 = vmatpush3.bf16.msra.mxu0 %v4501_v5 }
0x1160   : > { %3464 = vmatprep.subr.bf16.mxu0 %v4187_v3  ;;  %v3462_v50 = vpop.f32.mrf.mxu1 }
0x1162   : > { %3453 = vmatmul.mubr.msk.bf16.vlgmr.msra.gmra.mxu0 %vm759_vm2, %v2093_v21  ;;  %v2224_v51 = vpop.f32.mrf.mxu1 }
0x1163   : > { %3465 = vmatpush3.bf16.xpose.msra.mxu0 %v4539_v36  ;;  %3466 = vmatprep.mubr.msk.bf16.mxu0 %vm4188_vm1, %v4187_v3 }
0x1164   : > { %3476 = vmatprep.subr.bf16.mxu0 %v4187_v3  ;;  %v3463_v52 = vpop.f32.mrf.mxu1 }
0x121a   : > { %v2086_v53 = vpop.f32.mrf.mxu0 }
0x121b   : > { %v2132_v54 = vadd.f32 %v2131_v45, %v2086_v53 }
0x121c   : > { %v3438_v55 = vpop.f32.mrf.mxu0 }
0x121d   : > { %v2137_v5 = vadd.f32 %v4622_v63, %v2132_v54 }
0x121e   : > { %v2089_v56 = vpop.f32.mrf.mxu0 }
0x121f   : > { %3768 = vtanh.f32 %v2137_v5 }
0x1220   : > { %v3439_v57 = vpop.f32.mrf.mxu0 }
0x1222   : > { %v2178_v58 = vpop.f32.mrf.mxu0 }
0x1223   : > { %v2222_v59 = vadd.f32 %v2221_v2, %v2178_v58 }
0x1224   : > { %v3454_v36 = vpop.f32.mrf.mxu0 }
0x1225   : > { %v2227_v60 = vadd.f32 %v4523_v11, %v2222_v59 }
0x1226   : > { %v2181_v61 = vpop.f32.mrf.mxu0 }
0x1227   : > { %3770 = vtanh.f32 %v2227_v60  ;;  %v3159_v8 = vmul.f32 -1.442695, %v2227_v60  ;;  %v3714_v61 = vld [vmem:[%s4942_s10 + $0x8] sm:$0xff]  }
0x1228   : > { %v3455_v62 = vpop.f32.mrf.mxu0 }
0x1229   : > { %3772 = vpow2.f32 %v3159_v8 }
0x122c   : > { %v3769_v0 = vpop.eup %3768 }
0x122d   : > { %v2139_v1 = vpack.c.bf16 %v3769_v0, %v3769_v0 }
0x122f   : > { %2141 = vst.msk [vmem:[#allocation2 + $0x2] sm:$0x1] %vm1260_vm6, %v2139_v1 }
0x1234   : > { %v3771_v7 = vpop.eup %3770 }
0x1235   : > { %2237 = vrot.lane.b32.xlu0 %v3771_v7, %s4189_s20 }
0x1236   : > { %v3773_v9 = vpop.eup %3772 }
0x1237   : > { %v2231_v10 = vadd.f32 1.0, %v3773_v9 }
0x1239   : > { %3774 = vrcp.f32 %v2231_v10 }
0x1246   : > { %v3775_v12 = vpop.eup %3774 }
0x1247   : > { %v2235_v11 = vmul.f32 %v3775_v12, %v4701_v28 }
0x12a7   : > { %v2238_v13 = vpop.permute.xlu0 %2237 }
0x12a8   : > { %v2240_v14 = vmul.f32 %v3775_v12, %v2238_v13 }
0x12aa   : > { %2242 = vrot.lane.b32.xlu1 %v2240_v14, %s4190_s22 }
0x131c   : > { %v2243_v15 = vpop.permute.xlu1 %2242 }
0x131d   : > { %v2245_v16 = vadd.f32 %v2243_v15, %v2235_v11 }
0x131f   : > { %3776 = vtanh.f32 %v2245_v16 }
0x132c   : > { %v3777_v17 = vpop.eup %3776 }
0x132d   : > { %2248 = vrot.lane.b32.xlu1 %v3777_v17, %s4189_s20 }
0x139f   : > { %v2249_v18 = vpop.permute.xlu1 %2248 }
0x13a0   : > { %v2251_v19 = vmul.f32 %v3775_v12, %v2249_v18 }
0x13a2   : > { %v2252_v20 = vpack.c.bf16 %v2251_v19, %v2251_v19 }
0x13a4   : > { %v2260_v21 = vrot.slane %v2252_v20, %v4549_v44 }
0x13a6   : > { %v2267_v22 = vrot.slane %v2260_v21, %v4549_v44  ;;  %v4834_v21 = vld [vmem:[%s4987_s8] ss:$0 sm:$0xff] }
0x13a8   : > { %v3160_v4 = vpack.i.b16 %v2267_v22, %v2267_v22  ;;  %v2269_v24 = vunpack.i.h.s16 %v2267_v22 }
0x13aa   : > { %v2274_v25 = vrot.slane %v3160_v4, %v4553_v49  ;;  %v2320_v26 = vpack.i.b16 %v2269_v24, %v2269_v24 }
0x13ac   : > { %2275 = vrot.lane.b32.xlu1 %v2274_v25, %s4190_s22  ;;  %v2324_v28 = vrot.slane %v2320_v26, %v4553_v49  ;;  %v2604_v25 = vld [vmem:[#allocation2] sm:$0x1] }
0x13ae   : > { %2325 = vrot.lane.b32.xlu0 %v2324_v28, %s4190_s22 }
0x141e   : > { %v2276_v29 = vpop.permute.xlu1 %2275 }
0x141f   : > { %3467 = vmatmul.mubr.msk.bf16.vlgmr.msra.gmra.mxu0 %vm759_vm2, %v2276_v29  ;;  %v2711_v29 = vld [vmem:[#allocation2 + $0x2] sm:$0x1] }
0x1420   : > { %v2326_v33 = vpop.permute.xlu0 %2325  ;;  %3477 = vmatpush3.bf16.msra.mxu0 %v4533_v34  ;;  %3478 = vmatprep.mubr.msk.bf16.mxu0 %vm4188_vm1, %v4187_v3 }
0x1421   : > { %3473 = vmatmul.mubr.msk.bf16.vlgmr.msra.gmra.mxu1 %vm759_vm2, %v2326_v33  ;;  %3488 = vmatprep.subr.bf16.mxu0 %v4187_v3 }
0x1422   : > { %3483 = vmatpush3.bf16.msra.mxu1 %v4535_v35  ;;  %3484 = vmatprep.mubr.msk.bf16.mxu1 %vm4188_vm1, %v4187_v3 }
0x1423   : > { %3496 = vmatprep.subr.bf16.mxu1 %v4187_v3 }
0x14df   : > { %v2314_v44 = vpop.f32.mrf.mxu0 }
0x14e0   : > { %v2370_v49 = vsel %vm1021_vm3, %v2314_v44, -inf }
0x14e1   : > { %v2364_v39 = vpop.f32.mrf.mxu1  ;;  %2371 = vmax.xlane.f32.xlu1 %v2370_v49  ;;  %v3468_v34 = vpop.f32.mrf.mxu0 }
0x14e2   : > { %v2373_v6 = vsel %vm1021_vm3, %v2364_v39, -inf }
0x14e3   : > { %2374 = vmax.xlane.f32.xlu0 %v2373_v6  ;;  %v2317_v40 = vpop.f32.mrf.mxu0  ;;  %v3474_v41 = vpop.f32.mrf.mxu1 }
0x14e5   : > { %v3469_v42 = vpop.f32.mrf.mxu0  ;;  %v2367_v43 = vpop.f32.mrf.mxu1 }
0x14e7   : > { %v3475_v45 = vpop.f32.mrf.mxu1 }
0x14f2   : > { %2532 = vrot.lane.b32.xlu1 %v2252_v20, %s4190_s22 }
0x14f6   : > { %2589 = vrot.lane.b32.xlu1 %v2245_v16, %s4192_s14 }
0x156a   : > { %v2372_v35 = vpop.xlane.xlu1 %2371 }
0x156b   : > { %v2376_v37 = vsub.f32 %v2314_v44, %v2372_v35 }
0x156c   : > { %v2375_v46 = vpop.xlane.xlu0 %2374 }
0x156d   : > { %v2377_v38 = vsub.f32 %v2364_v39, %v2375_v46  ;;  %v2378_v48 = vmul.f32 1.442695, %v2376_v37 }
0x156e   : > { %v2533_v47 = vpop.permute.xlu1 %2532 }
0x156f   : > { %v2380_v32 = vmul.f32 1.442695, %v2377_v38 }
0x1571   : > { %3778 = vpow2.f32 %v2380_v32 }
0x1572   : > { %v2590_v2 = vpop.permute.xlu1 %2589  ;;  %3780 = vpow2.f32 %v2378_v48 }
0x1573   : > { %2592 = vst.msk [vmem:[#allocation21] sm:$0x3] %vm2586_vm7, %v2590_v2 }
0x157e   : > { %v3779_v50 = vpop.eup %3778 }
0x157f   : > { %v2385_v51 = vsel %vm1021_vm3, %v3779_v50, 0.0  ;;  %v3781_v52 = vpop.eup %3780 }
0x1580   : > { %2386 = vadd.xlane.f32.xlu0 %v2385_v51  ;;  %v2382_v53 = vsel %vm1021_vm3, %v3781_v52, 0.0 }
0x1584   : > { %2383 = vadd.xlane.f32.xlu0 %v2382_v53 }
0x159a   : > { %2583 = vrot.lane.b32.xlu0 %v2251_v19, %s4190_s22 }
0x1609   : > { %v2387_v54 = vpop.xlane.xlu0 %2386 }
0x160a   : > { %3782 = vrcp.f32 %v2387_v54 }
0x160d   : > { %v2384_v55 = vpop.xlane.xlu0 %2383 }
0x160e   : > { %3784 = vrcp.f32 %v2384_v55 }
0x1611   : > { %v2584_v5 = vpop.permute.xlu0 %2583 }
0x1612   : > { %2587 = vst.msk [vmem:[#allocation19] sm:$0x3] %vm2586_vm7, %v2584_v5 }
0x1617   : > { %v3783_v56 = vpop.eup %3782 }
0x1618   : > { %v2391_v57 = vmul.f32 %v3783_v56, %v3779_v50 }
0x161a   : > { %v2393_v58 = vpack.c.bf16 %v2391_v57, %v2391_v57 }
0x161b   : > { %v3785_v59 = vpop.eup %3784 }
0x161c   : > { %3485 = vmatmul.mubr.msk.bf16.vlgmr.msra.gmra.mxu1 %vm1047_vm4, %v2393_v58  ;;  %v2390_v36 = vmul.f32 %v3785_v59, %v3781_v52 }
0x161d   : > { %3497 = vmatpush3.bf16.msra.mxu1 %v4574_v23  ;;  %3500 = vmatprep.mubr.msk.bf16.mxu1 %vm4188_vm1, %v4187_v3  ;;  %v3715_v23 = vld [vmem:[%s4942_s10] sm:$0xff]  }
0x161e   : > { %v2392_v60 = vpack.c.bf16 %v2390_v36, %v2390_v36  ;;  %3498 = vmatprep.subr.bf16.mxu1 %v4187_v3 }
0x1620   : > { %3479 = vmatmul.mubr.msk.bf16.vlgmr.msra.gmra.mxu0 %vm1047_vm4, %v2392_v60 }
0x1621   : > { %3499 = vmatpush3.bf16.msra.mxu1 %v4578_v27  ;;  %3489 = vmatpush3.bf16.msra.mxu0 %v4595_v30  ;;  %v2664_v27 = vld [vmem:[#allocation2 + $0x1] sm:$0x1] }
0x1622   : > { %3512 = vmatprep.subr.bf16.mxu1 %v4187_v3  ;;  %3490 = vmatprep.subr.bf16.mxu0 %v4187_v3 }
0x1623   : > { %3492 = vmatprep.mubr.msk.bf16.mxu0 %vm4188_vm1, %v4187_v3 }
0x1624   : > { %3501 = vmatmul.mubr.msk.bf16.vlgmr.msra.gmra.mxu1 %vm759_vm2, %v2533_v47 }
0x1625   : > { %3513 = vmatpush3.bf16.msra.mxu1 %v3714_v61  ;;  %3516 = vmatprep.mubr.msk.bf16.mxu1 %vm4188_vm1, %v4187_v3 }
0x1626   : > { %3514 = vmatprep.subr.bf16.mxu1 %v4187_v3  ;;  %3491 = vmatpush3.bf16.msra.mxu0 %v4599_v31 }
0x1627   : > { %3504 = vmatprep.subr.bf16.mxu0 %v4187_v3 }
0x1629   : > { %3515 = vmatpush3.bf16.msra.mxu1 %v3715_v23 }
0x162a   : > { %3528 = vmatprep.subr.bf16.mxu1 %v4187_v3 }
0x162c   : > { %3517 = vmatmul.mubr.msk.bf16.vlgmr.msra.gmra.mxu1 %vm759_vm2, %v2664_v27 }
0x162d   : > { %3529 = vmatpush3.bf16.msra.mxu1 %v3714_v61  ;;  %3532 = vmatprep.mubr.msk.bf16.mxu1 %vm4188_vm1, %v4187_v3 }
0x162e   : > { %3530 = vmatprep.subr.bf16.mxu1 %v4187_v3 }
0x1631   : > { %3531 = vmatpush3.bf16.msra.mxu1 %v3715_v23 }
0x16dc   : > { %v2474_v30 = vpop.f32.mrf.mxu1 }
0x16dd   : > { %v2481_v62 = vpack.c.bf16 %v2474_v30, %v2474_v30 }
0x16de   : > { %v3486_v0 = vpop.f32.mrf.mxu1 }
0x16df   : > { %v2485_v1 = vunpack.c.l.b16 %v2481_v62 }
0x16e0   : > { %v2431_v31 = vpop.f32.mrf.mxu0  ;;  %v2477_v7 = vpop.f32.mrf.mxu1 }
0x16e1   : > { %v2480_v8 = vpack.c.bf16 %v2431_v31, %v2431_v31  ;;  %v2486_v12 = vrot.slane %v2485_v1, 7 }
0x16e2   : > { %v3480_v9 = vpop.f32.mrf.mxu0  ;;  %v3487_v10 = vpop.f32.mrf.mxu1 }
0x16e3   : > { %v2484_v13 = vunpack.c.l.b16 %v2480_v8 }
0x16e4   : > { %v2434_v14 = vpop.f32.mrf.mxu0  ;;  %v2571_v11 = vpop.f32.mrf.mxu1 }
0x16e5   : > { %v2487_v15 = vsel %vm1142_vm5, %v2486_v12, %v2484_v13 }
0x16e6   : > { %v2488_v16 = vpack.c.b16 %v2487_v15, %v2487_v15  ;;  %v3481_v17 = vpop.f32.mrf.mxu0  ;;  %v3502_v18 = vpop.f32.mrf.mxu1 }
0x16e8   : > { %3493 = vmatmul.mubr.msk.bf16.vlgmr.msra.gmra.mxu0 %vm759_vm2, %v2488_v16  ;;  %v2574_v19 = vpop.f32.mrf.mxu1 }
0x16e9   : > { %3505 = vmatpush3.bf16.msra.mxu0 %v3714_v61  ;;  %3508 = vmatprep.mubr.msk.bf16.mxu0 %vm4188_vm1, %v4187_v3 }
0x16ea   : > { %v3503_v20 = vpop.f32.mrf.mxu1  ;;  %3506 = vmatprep.subr.bf16.mxu0 %v4187_v3 }
0x16ec   : > { %v2702_v22 = vpop.f32.mrf.mxu1 }
0x16ed   : > { %v2703_v4 = vadd.f32 %v4834_v21, %v2702_v22  ;;  %3507 = vmatpush3.bf16.msra.mxu0 %v3715_v23 }
0x16ee   : > { %v3518_v24 = vpop.f32.mrf.mxu1  ;;  %3520 = vmatprep.subr.bf16.mxu0 %v4187_v3 }
0x16ef   : > { %3172 = vst.msk [vmem:[%s4488_s6 + $0x2] sm:$0x3] %vm2661_vm8, %v2703_v4 }
0x16f0   : > { %3509 = vmatmul.mubr.msk.bf16.vlgmr.msra.gmra.mxu0 %vm759_vm2, %v2604_v25  ;;  %v2705_v26 = vpop.f32.mrf.mxu1 }
0x16f1   : > { %3521 = vmatpush3.bf16.msra.mxu0 %v3714_v61  ;;  %3524 = vmatprep.mubr.msk.bf16.mxu0 %vm4188_vm1, %v4187_v3 }
0x16f2   : > { %v3519_v28 = vpop.f32.mrf.mxu1  ;;  %3522 = vmatprep.subr.bf16.mxu0 %v4187_v3 }
0x16f5   : > { %3523 = vmatpush3.bf16.msra.mxu0 %v3715_v23 }
0x16f8   : > { %3525 = vmatmul.mubr.msk.bf16.vlgmr.msra.gmra.mxu0 %vm759_vm2, %v2711_v29 }
0x17a8   : > { %v2526_v33 = vpop.f32.mrf.mxu0 }
0x17a9   : > { %v2572_v44 = vadd.f32 %v2571_v11, %v2526_v33 }
0x17aa   : > { %v3494_v49 = vpop.f32.mrf.mxu0 }
0x17ab   : > { %v2577_v39 = vadd.f32 %v4622_v63, %v2572_v44 }
0x17ac   : > { %v2529_v34 = vpop.f32.mrf.mxu0 }
0x17ad   : > { %3786 = vtanh.f32 %v2577_v39 }
0x17ae   : > { %v3495_v6 = vpop.f32.mrf.mxu0 }
0x17b0   : > { %v2655_v40 = vpop.f32.mrf.mxu0 }
0x17b1   : > { %v2656_v41 = vadd.f32 %v4834_v21, %v2655_v40 }
0x17b2   : > { %v3510_v42 = vpop.f32.mrf.mxu0 }
0x17b3   : > { %2662 = vst.msk [vmem:[%s4488_s6] sm:$0x3] %vm2661_vm8, %v2656_v41 }
0x17b4   : > { %v2658_v3 = vpop.f32.mrf.mxu0 }
0x17b6   : > { %v3511_v43 = vpop.f32.mrf.mxu0 }
0x17b8   : > { %v2749_v45 = vpop.f32.mrf.mxu0 }
0x17b9   : > { %v2750_v35 = vadd.f32 %v4834_v21, %v2749_v45 }
0x17ba   : > { %v3787_v37 = vpop.eup %3786  ;;  %v3526_v46 = vpop.f32.mrf.mxu0 }
0x17bb   : > { %v2579_v38 = vpack.c.bf16 %v3787_v37, %v3787_v37  ;;  %3174 = vst.msk [vmem:[%s4488_s6 + $0x4] sm:$0x3] %vm2661_vm8, %v2750_v35 }
0x17bc   : > { %v2752_v63 = vpop.f32.mrf.mxu0 }
0x17bd   : > { %2581 = vst.msk [vmem:[#allocation2 + $0x3] sm:$0x1] %vm1260_vm6, %v2579_v38 }
0x17be   : > { %v3527_v47 = vpop.f32.mrf.mxu0 }
0x17c4   : > { %v2758_v48 = vld [vmem:[#allocation2 + $0x3] sm:$0x1] }
0x17c5   : > { %3533 = vmatmul.mubr.msk.bf16.vlgmr.msra.gmra.mxu1 %vm759_vm2, %v2758_v48 }
0x17c6   : > { %4037 = shalt.err (!%p4034_p9)
}
0x17c7   : > { %s4988_s20 = sld [smem:[#allocation39_spill]]  ;;  %s4194_s14 = smov [#allocation21]  }
0x17c8   : > { %s2849_s1 = sshll.u32 %s4194_s14, 4  ;;  %s2850_s1 = int_to_ptr.vmem [resolvable:$true] %s2849_s1 }
0x17c9   : > { %s4048_s19 = scalar_lea.vmem %s2850_s1, 32  ;;  %p4055_p8 = scmp.lt.s32.totalorder %s2850_s1, %s2850_s1 }
0x17ca   : > { %p4049_p11 = scmp.ne.s32.totalorder %s2850_s1, %s4048_s19  ;;  %p4056_p12 = scmp.lt.s32.totalorder %s4048_s19, %s4048_s19 }
0x17cc   : > { %p4050_p0 = pnand %p4049_p11, %p4419_p6  ;;  %p4057_p3 = por %p4056_p12, %p4055_p8 }
0x17cd   : > { %3572 = dma.vmem_to_hbm [thread:$0]  (%p4419_p6), %s2837_s27, 32, %s4988_s20, [#allocation20]  }
0x17ce   : > { %p4051_p13 = pneg %p4050_p0 }
0x17d0   : > { %p4058_p1 = pnand %p4057_p3, %p4051_p13 }
0x17d2   : > { %4061 = shalt.err (!%p4058_p1)
}
0x17d3   : > { %s4989_s5 = sld [smem:[#allocation40_spill]]  ;;  %s3187_s13 = sshll.u32 %s4164_s16, 7 }
0x17d4   : > { %s2820_s8 = sshll.u32 %s4488_s6, 4  ;;  %s4990_s4 = sld [smem:[#allocation38_spill]]  ;;  %s4876_s8 = int_to_ptr.vmem [resolvable:$true] %s2820_s8 }
0x17d5   : > { %s2805_s21 = scalar_lea.sflag [#allocation5], %s4461_s23  ;;  %s4072_s16 = scalar_lea.vmem %s4876_s8, 128 }
0x17d6   : > { %p4073_p5 = scmp.ne.s32.totalorder %s4876_s8, %s4072_s16  ;;  %p4991_p2 = scmp.ne.s32.totalorder %s4984_s26, 0 }
0x17d7   : > { %s4195_s20 = smov [#allocation18]  }
0x17d8   : > { %p4074_p4 = pnand %p4073_p5, %p4991_p2  ;;  %s4076_s14 = sshll.u32 %s4195_s20, 4  ;;  %s4077_s14 = int_to_ptr.vmem [resolvable:$false] %s4076_s14 }
0x17d9   : > { %3574 = dma.vmem_to_hbm [thread:$0]  (%p4419_p6), %s2850_s1, 32, %s4989_s5, [#allocation20]  }
0x17da   : > { %s4873_s7 = scalar_lea.hbm %s4990_s4, %s3187_s13  ;;  %p4075_p10 = pneg %p4074_p4 }
0x17db   : > { %s4078_s1 = scalar_lea.vmem %s4077_s14, 256  ;;  %p4079_p7 = scmp.lt.s32.totalorder %s4876_s8, %s4077_s14 }
0x17dc   : > { %p4080_p9 = scmp.lt.s32.totalorder %s4078_s1, %s4072_s16 }
0x17de   : > { %p4081_p11 = por %p4080_p9, %p4079_p7 }
0x17e0   : > { %p4082_p0 = pnand %p4081_p11, %p4075_p10 }
0x1885   : > { %v2796_v32 = vpop.f32.mrf.mxu1 }
0x1886   : > { %v2797_v2 = vadd.f32 %v4834_v21, %v2796_v32 }
0x1887   : > { %v3534_v50 = vpop.f32.mrf.mxu1 }
0x1888   : > { %3176 = vst.msk [vmem:[%s4488_s6 + $0x6] sm:$0x3] %vm2661_vm8, %v2797_v2 }
0x1889   : > { %v2799_v51 = vpop.f32.mrf.mxu1 }
0x188a   : > { %4085 = shalt.err (!%p4082_p0)
}
0x188b   : > { %s4086_s6 = scalar_lea.hbm %s4873_s7, 128  ;;  %s4090_s3 = scalar_lea.hbm %s4990_s4, 256 }
0x188c   : > { %p4087_p13 = scmp.ne.s32.totalorder %s4873_s7, %s4086_s6  ;;  %p4091_p3 = scmp.lt.s32.totalorder %s4873_s7, %s4990_s4 }
0x188d   : > { %p4092_p1 = scmp.lt.s32.totalorder %s4090_s3, %s4086_s6 }
0x188e   : > { %p4088_p8 = pnand %p4087_p13, %p4991_p2 }
0x188f   : > { %p4093_p5 = por %p4092_p1, %p4091_p3 }
0x1890   : > { %p4089_p12 = pneg %p4088_p8 }
0x1892   : > { %p4094_p4 = pnand %p4093_p5, %p4089_p12 }
0x1894   : > { %4097 = shalt.err (!%p4094_p4)
}
0x1895   : > { %s4196_s9 = smov 2   ;;  %v3535_v52 = vpop.f32.mrf.mxu1 }
0x1896   : > { %3570 = dma.vmem_to_hbm [thread:$0]  (%p4991_p2), %s4876_s8, 128, %s4873_s7, %s2805_s21, %s4190_s22, %s4190_s22, %s4196_s9  }
0x1897   : > { %4143 = dma.done.wait (%p4419_p6), [#allocation20], 64  }
0x1898   : > { %4145 = vsyncadd (%p4419_p6), [#allocation20], 4294967232 }
0x1899 PF: > { %s2869_s27 = sand.u32 1, %s4152_s29   ;;  %p4992_p10 = scmp.ne.s32.totalorder %s4985_s25, 0 }
0x189a   : > { %p4993_p7 = scmp.ge.s32.totalorder %s4172_s18, 2  ;;  %s2870_s26 = scalar_lea.sflag [#allocation5], %s2869_s27 }
0x189c   : > { %p3610_p9 = pnand %p4993_p7, %p4992_p10 }
0x189e   : > { %p3611_p11 = pneg %p3610_p9 }
0x18a0   : > { %4147 = dma.done.wait (%p3611_p11), %s2870_s26, 128  }
0x18a1   : > { %4149 = vsyncadd (%p3611_p11), %s2870_s26, 4294967168  ;;  %s36_s18 = sadd.s32 1, %s4172_s18   ;;  %s4994_s29 = smov %s4156_s30 }
0x18a2   : > { %p33_p2 = scmp.ge.s32.totalorder %s36_s18, 4   ;;  %s4995_s30 = smov %s4160_s15 }
0x18a3   : > { %s4996_s15 = smov %s4436_s28  ;;  %s4997_s16 = smov %s4168_s17 }
0x18a4   : > { %s4998_s17 = smov %s5000_s12  ;;  %35 = sbr.rel (!%p33_p2) target bundleno = 24 (0x18), region = 194 }
0x18a9   :  { %2875 = vsyncpa [#allocation4], 1 }
0x18aa   :  { %2877 = vsyncpa [#allocation4 + $0x1], 1 }
0x18ab   :  { %2878 = vsyncpa [#allocation7], 1 }
0x18ac   :  { %2879 = vsyncpa [#allocation10], 1 }
0x18ad   :  { %2880 = vsyncpa [#allocation13], 1 }
0x18ae   :  { %2881 = vsyncpa [#allocation16], 1 }
0x18af   :  { %2882 = vsyncpa [#allocation5], 1 }
0x18b0   :  { %2884 = vsyncpa [#allocation5 + $0x1], 1 }
0x18b1   :  { %2885 = vsyncpa [#allocation20], 1 }

</bundles_post_ra>
